<compile_context>
chip_gen: v7x
topology: tpu7x:2x2x1
jax: 0.10.0
libtpu: 0.0.40
codegen_flags: <defaults>
</compile_context>

<pallas_src>
import functools

import jax
import jax.numpy as jnp
from jax import lax
from jax.experimental import pallas as pl
from jax.experimental.pallas import tpu as pltpu


def _round_up(n: int, m: int) -> int:
    return ((n + m - 1) // m) * m


def _pick_time_chunk(T: int, max_chunk: int = 64) -> int:
    """Largest divisor of T that is <= max_chunk (caps gx scratch in VMEM)."""
    if T <= max_chunk:
        return T
    for c in range(max_chunk, 0, -1):
        if T % c == 0:
            return c
    return 1


def _make_lstm_kernel(num_layers: int, hidden_size: int, seq_len: int,
                      batch_block: int, time_chunk: int, unroll: int):
    L, H, T, BPC, Tc = num_layers, hidden_size, seq_len, batch_block, time_chunk
    G = 4 * H
    n_chunks = T // Tc

    def kernel(*refs):
        # inputs: x3d, w_in[0..L-1], w_rec, bias, fc_w, fc_b | out | scratch
        x_ref = refs[0]                  # (T, BPC, I)   time-major batch block
        w_in_refs = refs[1:1 + L]        # layer l: (I_l, 4H), cols = [i|f|o|g]
        w_rec_ref = refs[1 + L]          # (L, H, 4H)    pre-transposed, permuted
        bias_ref = refs[2 + L]           # (L, 1, 4H)    b_ih + b_hh, permuted
        fc_w_ref = refs[3 + L]           # (1, H)
        fc_b_ref = refs[4 + L]           # (1, 1)
        out_ref = refs[5 + L]            # (BPC, 1)
        gx_ref = refs[6 + L]             # scratch (Tc*BPC, 4H): chunk projections
        hs_ref = refs[7 + L]             # scratch (T*BPC, H): layer output seq

        in_dim0 = x_ref.shape[2]
        h_last = None

        for layer in range(L):           # L is small & static -> Python-unrolled
            w_in_l = w_in_refs[layer][...]     # loaded once per layer
            w_rec_l = w_rec_ref[layer]         # (H, 4H)
            bias_l = bias_ref[layer]           # (1, 4H)
            write_hs = layer < L - 1           # last layer's seq is never reused
            is_first = layer == 0

            def chunk_body(c, carry, _w_in=w_in_l, _w_rec=w_rec_l,
                           _bias=bias_l, _write=write_hs, _first=is_first):
                t0 = pl.multiple_of(c * Tc, Tc)
                row0 = pl.multiple_of(c * (Tc * BPC), Tc * BPC)
                if _first:
                    inp = x_ref[pl.ds(t0, Tc)].reshape(Tc * BPC, in_dim0)
                else:
                    inp = hs_ref[pl.ds(row0, Tc * BPC), :]
                # Input projection for this chunk: one MXU matmul + folded bias.
                gx_ref[...] = (jnp.dot(inp, _w_in,
                                       preferred_element_type=jnp.float32)
                               + _bias)

                def step(s, hc):
                    h_prev, c_prev = hc            # (BPC, H) each
                    r = pl.multiple_of(s * BPC, BPC)
                    gates = gx_ref[pl.ds(r, BPC), :] + jnp.dot(
                        h_prev, _w_rec, preferred_element_type=jnp.float32)
                    # Columns are [i | f | o | g]: sigmoid on 3H, tanh on H.
                    sg = jax.nn.sigmoid(gates[:, :3 * H])
                    g_g = jnp.tanh(gates[:, 3 * H:])
                    i_g = sg[:, :H]
                    f_g = sg[:, H:2 * H]
                    o_g = sg[:, 2 * H:]
                    c_new = f_g * c_prev + i_g * g_g
                    h_new = o_g * jnp.tanh(c_new)
                    if _write:
                        hs_ref[pl.ds(row0 + r, BPC), :] = h_new
                    return (h_new, c_new)

                return lax.fori_loop(0, Tc, step, carry, unroll=unroll)

            init = (jnp.zeros((BPC, H), jnp.float32),
                    jnp.zeros((BPC, H), jnp.float32))
            h_last, _ = lax.fori_loop(0, n_chunks, chunk_body, init)

        # fc(out[:, -1, :]) with out_features == 1: VPU multiply + lane reduce
        # (avoids a pure-drain N=1 MXU pass). Full-sublane (BPC, 1) store.
        out_ref[...] = (jnp.sum(h_last * fc_w_ref[...], axis=-1, keepdims=True)
                        + fc_b_ref[...])

    return kernel


@functools.partial(jax.jit, static_argnames=("batch_blocks",))
def lstm_forward_pallas(x, params, batch_blocks: int = 1):
    """x: (B, T, I) float32 (batch_first, like PyTorch). Returns (B, 1).

    batch_blocks=2 shards padded-batch rows across the two TensorCores of a
    v7x chip (use only when the padded batch is >= 16); default 1 is best for
    single-core v5e/v6e.
    """
    B, T, I = x.shape
    L = len(params["w_hh"])
    H = params["w_hh"][0].shape[1]
    G = 4 * H
    BP = _round_up(B, 8)                     # pad batch to a full sublane group

    if batch_blocks < 1 or BP % batch_blocks != 0 or (BP // batch_blocks) % 8 != 0:
        batch_blocks = 1
    BPC = BP // batch_blocks                 # batch rows per grid program
    Tc = _pick_time_chunk(T)                 # time steps per projection chunk
    unroll = min(8, Tc)

    # --- One-time host-side prep (tiny, fused under jit) -------------------
    # Time-major, sublane-padded input.
    x_t = jnp.transpose(x, (1, 0, 2)).astype(jnp.float32)           # (T, B, I)
    x_p = jnp.zeros((T, BP, I), jnp.float32).at[:, :B, :].set(x_t)  # (T, BP, I)

    # Gate-column permutation: PyTorch [i|f|g|o] -> kernel [i|f|o|g], so the
    # kernel can sigmoid the first 3H columns and tanh only the last H.
    perm = jnp.concatenate([jnp.arange(0, H), jnp.arange(H, 2 * H),
                            jnp.arange(3 * H, 4 * H), jnp.arange(2 * H, 3 * H)])
    w_in = [jnp.transpose(w).astype(jnp.float32)[:, perm]
            for w in params["w_ih"]]                                  # (I_l, 4H)
    w_rec = jnp.stack([jnp.transpose(w)[:, perm]
                       for w in params["w_hh"]]).astype(jnp.float32)  # (L, H, 4H)
    bias = jnp.stack([
        (params["b_ih"][l] + params["b_hh"][l]).reshape(G)[perm].reshape(1, G)
        for l in range(L)]).astype(jnp.float32)                       # (L, 1, 4H)
    fc_w = params["fc_w"].reshape(1, H).astype(jnp.float32)
    fc_b = params["fc_b"].reshape(1, 1).astype(jnp.float32)

    # --- VMEM budget (per core): blocks + scratch, x2 for double buffering --
    f32b = 4
    resident = (T * BPC * I                              # x block
                + sum(int(w.shape[0]) * G for w in w_in)  # w_in
                + L * H * G + L * G + H + 1              # w_rec, bias, fc
                + Tc * BPC * G                           # gx scratch
                + T * BPC * H                            # hs scratch
                + BPC) * f32b                            # out block
    vmem_limit = int(min(64 * 1024 * 1024,
                         max(32 * 1024 * 1024, 2 * resident + (4 << 20))))

    kernel = _make_lstm_kernel(L, H, T, BPC, Tc, unroll)

    in_specs = [pl.BlockSpec((T, BPC, I), lambda b: (0, b, 0))]
    in_specs += [pl.BlockSpec(w.shape, lambda b: (0, 0)) for w in w_in]
    in_specs += [pl.BlockSpec(w_rec.shape, lambda b: (0, 0, 0)),
                 pl.BlockSpec(bias.shape, lambda b: (0, 0, 0)),
                 pl.BlockSpec(fc_w.shape, lambda b: (0, 0)),
                 pl.BlockSpec(fc_b.shape, lambda b: (0, 0))]

    out_padded = pl.pallas_call(
        kernel,
        out_shape=jax.ShapeDtypeStruct((BP, 1), jnp.float32),
        grid=(batch_blocks,),
        in_specs=in_specs,
        out_specs=pl.BlockSpec((BPC, 1), lambda b: (b, 0)),
        scratch_shapes=[
            pltpu.VMEM((Tc * BPC, G), jnp.float32),   # gx: chunk projections
            pltpu.VMEM((T * BPC, H), jnp.float32),    # hs: layer output sequence
        ],
        compiler_params=pltpu.CompilerParams(
            dimension_semantics=("parallel",),
            vmem_limit_bytes=vmem_limit),
    )(x_p, *w_in, w_rec, bias, fc_w, fc_b)

    return out_padded[:B]


def lstm_forward_ref(x, params):
    """Pure-JAX reference matching PyTorch nn.LSTM + Linear semantics."""
    B, T, _ = x.shape
    L = len(params["w_hh"])
    H = params["w_hh"][0].shape[1]
    h = [jnp.zeros((B, H), jnp.float32) for _ in range(L)]
    c = [jnp.zeros((B, H), jnp.float32) for _ in range(L)]
    for t in range(T):
        inp = x[:, t, :]
        for l in range(L):
            gates = (inp @ params["w_ih"][l].T + params["b_ih"][l]
                     + h[l] @ params["w_hh"][l].T + params["b_hh"][l])
            i_g = jax.nn.sigmoid(gates[:, 0 * H:1 * H])
            f_g = jax.nn.sigmoid(gates[:, 1 * H:2 * H])
            g_g = jnp.tanh(gates[:, 2 * H:3 * H])
            o_g = jax.nn.sigmoid(gates[:, 3 * H:4 * H])
            c[l] = f_g * c[l] + i_g * g_g
            h[l] = o_g * jnp.tanh(c[l])
            inp = h[l]
    return inp @ params["fc_w"].T + params["fc_b"]


def init_params(key, input_size, hidden_size, num_layers):
    """Deterministic init mimicking PyTorch's U(-1/sqrt(H), 1/sqrt(H))."""
    H = hidden_size
    stdv = 1.0 / jnp.sqrt(jnp.float32(H))
    keys = jax.random.split(key, 4 * num_layers + 2)
    w_ih, w_hh, b_ih, b_hh = [], [], [], []
    k = 0
    for l in range(num_layers):
        in_dim = input_size if l == 0 else hidden_size
        w_ih.append(jax.random.uniform(keys[k], (4 * H, in_dim), jnp.float32,
                                       -stdv, stdv)); k += 1
        w_hh.append(jax.random.uniform(keys[k], (4 * H, H), jnp.float32,
                                       -stdv, stdv)); k += 1
        b_ih.append(jax.random.uniform(keys[k], (1, 4 * H), jnp.float32,
                                       -stdv, stdv)); k += 1
        b_hh.append(jax.random.uniform(keys[k], (1, 4 * H), jnp.float32,
                                       -stdv, stdv)); k += 1
    fc_w = jax.random.uniform(keys[k], (1, H), jnp.float32, -stdv, stdv); k += 1
    fc_b = jax.random.uniform(keys[k], (1, 1), jnp.float32, -stdv, stdv)
    return dict(w_ih=w_ih, w_hh=w_hh, b_ih=b_ih, b_hh=b_hh, fc_w=fc_w, fc_b=fc_b)


if __name__ == "__main__":
    batch, seq_len, input_size, hidden_size, num_layers = 2, 8, 16, 32, 2

    key = jax.random.PRNGKey(0)
    k_x, k_p = jax.random.split(key)
    x = jax.random.normal(k_x, (batch, seq_len, input_size), jnp.float32)
    params = init_params(k_p, input_size, hidden_size, num_layers)

    out = lstm_forward_pallas(x, params)
    out = jax.block_until_ready(out)

    ref = lstm_forward_ref(x, params)
    assert out.shape == (batch, 1), out.shape
    assert jnp.allclose(out, ref, atol=1e-4, rtol=1e-4), (out, ref)

    print("KERNEL_OK")
</pallas_src>

<mosaic_0001>
module attributes {stable_mosaic.version = 11 : i64} {
  func.func @kernel(%arg0: i32, %arg1: memref<8x8x16xf32, #tpu.memory_space<vmem>>, %arg2: memref<16x128xf32, #tpu.memory_space<vmem>>, %arg3: memref<32x128xf32, #tpu.memory_space<vmem>>, %arg4: memref<2x32x128xf32, #tpu.memory_space<vmem>>, %arg5: memref<2x1x128xf32, #tpu.memory_space<vmem>>, %arg6: memref<1x32xf32, #tpu.memory_space<vmem>>, %arg7: memref<1x1xf32, #tpu.memory_space<vmem>>, %arg8: memref<8x1xf32, #tpu.memory_space<vmem>>, %arg9: memref<64x128xf32, #tpu.memory_space<vmem>>, %arg10: memref<64x32xf32, #tpu.memory_space<vmem>>) attributes {dimension_semantics = [#tpu.dimension_semantics<parallel>], iteration_bounds = array<i64: 1>, scalar_prefetch = 0 : i64, scratch_operands = 2 : i64, tpu.core_type = #tpu.core_type<tc>, window_params = [{transform_indices = @transform_0, window_bounds = array<i64: 8, 8, 16>}, {pipeline_mode = #tpu.pipeline_mode<synchronous>, transform_indices = @transform_1, window_bounds = array<i64: 16, 128>}, {pipeline_mode = #tpu.pipeline_mode<synchronous>, transform_indices = @transform_2, window_bounds = array<i64: 32, 128>}, {pipeline_mode = #tpu.pipeline_mode<synchronous>, transform_indices = @transform_3, window_bounds = array<i64: 2, 32, 128>}, {pipeline_mode = #tpu.pipeline_mode<synchronous>, transform_indices = @transform_4, window_bounds = array<i64: 2, 1, 128>}, {pipeline_mode = #tpu.pipeline_mode<synchronous>, transform_indices = @transform_5, window_bounds = array<i64: 1, 32>}, {pipeline_mode = #tpu.pipeline_mode<synchronous>, transform_indices = @transform_6, window_bounds = array<i64: 1, 1>}, {transform_indices = @transform_7, window_bounds = array<i64: 8, 1>}]} {
    %c0 = arith.constant 0 : index
    %c0_0 = arith.constant 0 : index
    %0 = vector.load %arg2[%c0, %c0_0] : memref<16x128xf32, #tpu.memory_space<vmem>>, vector<16x128xf32>
    %c0_1 = arith.constant 0 : index
    %c0_2 = arith.constant 0 : index
    %c0_3 = arith.constant 0 : index
    %1 = vector.load %arg4[%c0_1, %c0_2, %c0_3] : memref<2x32x128xf32, #tpu.memory_space<vmem>>, vector<1x32x128xf32>
    %2 = vector.shape_cast %1 : vector<1x32x128xf32> to vector<32x128xf32>
    %c0_4 = arith.constant 0 : index
    %c0_5 = arith.constant 0 : index
    %c0_6 = arith.constant 0 : index
    %3 = vector.load %arg5[%c0_4, %c0_5, %c0_6] : memref<2x1x128xf32, #tpu.memory_space<vmem>>, vector<1x1x128xf32>
    %4 = vector.shape_cast %3 : vector<1x1x128xf32> to vector<1x128xf32>
    %cst = arith.constant 0.000000e+00 : f32
    %5 = vector.broadcast %cst : f32 to vector<8x32xf32>
    %cst_7 = arith.constant 0.000000e+00 : f32
    %6 = vector.broadcast %cst_7 : f32 to vector<8x32xf32>
    %c0_i32 = arith.constant 0 : i32
    %c8_i32 = arith.constant 8 : i32
    %7 = arith.muli %c0_i32, %c8_i32 : i32
    %8 = tpu.assume_multiple %7, 8 : i32
    %c64_i32 = arith.constant 64 : i32
    %9 = arith.muli %c0_i32, %c64_i32 : i32
    %10 = tpu.assume_multiple %9, 64 : i32
    %11 = arith.index_cast %8 : i32 to index
    %c0_8 = arith.constant 0 : index
    %c0_9 = arith.constant 0 : index
    %12 = vector.load %arg1[%11, %c0_8, %c0_9] : memref<8x8x16xf32, #tpu.memory_space<vmem>>, vector<8x8x16xf32>
    %13 = vector.shape_cast %12 : vector<8x8x16xf32> to vector<64x16xf32>
    %cst_10 = arith.constant dense<0.000000e+00> : vector<64x128xf32>
    %14 = tpu.matmul %13, %0, %cst_10 {dimension_numbers = #tpu.dot_dimension_numbers<[1], [0], [0], [1], [0, 0, 1, 1], [], []>} : vector<64x16xf32>, vector<16x128xf32>, vector<64x128xf32> -> vector<64x128xf32>
    %15 = vector.broadcast %4 : vector<1x128xf32> to vector<64x128xf32>
    %16 = arith.addf %14, %15 : vector<64x128xf32>
    %c0_11 = arith.constant 0 : index
    %c0_12 = arith.constant 0 : index
    %17 = vector.load %arg9[%c0_11, %c0_12] : memref<64x128xf32, #tpu.memory_space<vmem>>, vector<64x128xf32>
    tpu.vector_store %arg9[%c0_11, %c0_12], %16 {strides = array<i32>} : memref<64x128xf32, #tpu.memory_space<vmem>>, vector<64x128xf32>,
    %c0_i32_13 = arith.constant 0 : i32
    %c8_i32_14 = arith.constant 8 : i32
    %18 = arith.muli %c0_i32_13, %c8_i32_14 : i32
    %19 = tpu.assume_multiple %18, 8 : i32
    %20 = arith.index_cast %19 : i32 to index
    %c0_15 = arith.constant 0 : index
    %21 = vector.load %arg9[%20, %c0_15] : memref<64x128xf32, #tpu.memory_space<vmem>>, vector<8x128xf32>
    %cst_16 = arith.constant dense<0.000000e+00> : vector<8x128xf32>
    %22 = tpu.matmul %5, %2, %cst_16 {dimension_numbers = #tpu.dot_dimension_numbers<[1], [0], [0], [1], [0, 0, 1, 1], [], []>} : vector<8x32xf32>, vector<32x128xf32>, vector<8x128xf32> -> vector<8x128xf32>
    %23 = arith.addf %21, %22 : vector<8x128xf32>
    %24 = vector.extract_strided_slice %23 {offsets = [0, 0], sizes = [8, 96], strides = [1, 1]} : vector<8x128xf32> to vector<8x96xf32>
    %25 = arith.negf %24 : vector<8x96xf32>
    %26 = math.exp %25 : vector<8x96xf32>
    %cst_17 = arith.constant 1.000000e+00 : f32
    %27 = vector.broadcast %cst_17 : f32 to vector<8x96xf32>
    %28 = arith.addf %27, %26 : vector<8x96xf32>
    %29 = arith.divf %27, %28 : vector<8x96xf32>
    %30 = vector.extract_strided_slice %23 {offsets = [0, 96], sizes = [8, 32], strides = [1, 1]} : vector<8x128xf32> to vector<8x32xf32>
    %31 = math.tanh %30 : vector<8x32xf32>
    %32 = vector.extract_strided_slice %29 {offsets = [0, 0], sizes = [8, 32], strides = [1, 1]} : vector<8x96xf32> to vector<8x32xf32>
    %33 = vector.extract_strided_slice %29 {offsets = [0, 32], sizes = [8, 32], strides = [1, 1]} : vector<8x96xf32> to vector<8x32xf32>
    %34 = vector.extract_strided_slice %29 {offsets = [0, 64], sizes = [8, 32], strides = [1, 1]} : vector<8x96xf32> to vector<8x32xf32>
    %35 = arith.mulf %33, %6 : vector<8x32xf32>
    %36 = arith.mulf %32, %31 : vector<8x32xf32>
    %37 = arith.addf %35, %36 : vector<8x32xf32>
    %38 = math.tanh %37 : vector<8x32xf32>
    %39 = arith.mulf %34, %38 : vector<8x32xf32>
    %40 = arith.addi %10, %19 : i32
    %41 = arith.index_cast %40 : i32 to index
    %c0_18 = arith.constant 0 : index
    %42 = vector.load %arg10[%41, %c0_18] : memref<64x32xf32, #tpu.memory_space<vmem>>, vector<8x32xf32>
    tpu.vector_store %arg10[%41, %c0_18], %39 {strides = array<i32>} : memref<64x32xf32, #tpu.memory_space<vmem>>, vector<8x32xf32>,
    %c1_i32 = arith.constant 1 : i32
    %c8_i32_19 = arith.constant 8 : i32
    %43 = arith.muli %c1_i32, %c8_i32_19 : i32
    %44 = tpu.assume_multiple %43, 8 : i32
    %45 = arith.index_cast %44 : i32 to index
    %c0_20 = arith.constant 0 : index
    %46 = vector.load %arg9[%45, %c0_20] : memref<64x128xf32, #tpu.memory_space<vmem>>, vector<8x128xf32>
    %cst_21 = arith.constant dense<0.000000e+00> : vector<8x128xf32>
    %47 = tpu.matmul %39, %2, %cst_21 {dimension_numbers = #tpu.dot_dimension_numbers<[1], [0], [0], [1], [0, 0, 1, 1], [], []>} : vector<8x32xf32>, vector<32x128xf32>, vector<8x128xf32> -> vector<8x128xf32>
    %48 = arith.addf %46, %47 : vector<8x128xf32>
    %49 = vector.extract_strided_slice %48 {offsets = [0, 0], sizes = [8, 96], strides = [1, 1]} : vector<8x128xf32> to vector<8x96xf32>
    %50 = arith.negf %49 : vector<8x96xf32>
    %51 = math.exp %50 : vector<8x96xf32>
    %cst_22 = arith.constant 1.000000e+00 : f32
    %52 = vector.broadcast %cst_22 : f32 to vector<8x96xf32>
    %53 = arith.addf %52, %51 : vector<8x96xf32>
    %54 = arith.divf %52, %53 : vector<8x96xf32>
    %55 = vector.extract_strided_slice %48 {offsets = [0, 96], sizes = [8, 32], strides = [1, 1]} : vector<8x128xf32> to vector<8x32xf32>
    %56 = math.tanh %55 : vector<8x32xf32>
    %57 = vector.extract_strided_slice %54 {offsets = [0, 0], sizes = [8, 32], strides = [1, 1]} : vector<8x96xf32> to vector<8x32xf32>
    %58 = vector.extract_strided_slice %54 {offsets = [0, 32], sizes = [8, 32], strides = [1, 1]} : vector<8x96xf32> to vector<8x32xf32>
    %59 = vector.extract_strided_slice %54 {offsets = [0, 64], sizes = [8, 32], strides = [1, 1]} : vector<8x96xf32> to vector<8x32xf32>
    %60 = arith.mulf %58, %37 : vector<8x32xf32>
    %61 = arith.mulf %57, %56 : vector<8x32xf32>
    %62 = arith.addf %60, %61 : vector<8x32xf32>
    %63 = math.tanh %62 : vector<8x32xf32>
    %64 = arith.mulf %59, %63 : vector<8x32xf32>
    %65 = arith.addi %10, %44 : i32
    %66 = arith.index_cast %65 : i32 to index
    %c0_23 = arith.constant 0 : index
    %67 = vector.load %arg10[%66, %c0_23] : memref<64x32xf32, #tpu.memory_space<vmem>>, vector<8x32xf32>
    tpu.vector_store %arg10[%66, %c0_23], %64 {strides = array<i32>} : memref<64x32xf32, #tpu.memory_space<vmem>>, vector<8x32xf32>,
    %c2_i32 = arith.constant 2 : i32
    %c8_i32_24 = arith.constant 8 : i32
    %68 = arith.muli %c2_i32, %c8_i32_24 : i32
    %69 = tpu.assume_multiple %68, 8 : i32
    %70 = arith.index_cast %69 : i32 to index
    %c0_25 = arith.constant 0 : index
    %71 = vector.load %arg9[%70, %c0_25] : memref<64x128xf32, #tpu.memory_space<vmem>>, vector<8x128xf32>
    %cst_26 = arith.constant dense<0.000000e+00> : vector<8x128xf32>
    %72 = tpu.matmul %64, %2, %cst_26 {dimension_numbers = #tpu.dot_dimension_numbers<[1], [0], [0], [1], [0, 0, 1, 1], [], []>} : vector<8x32xf32>, vector<32x128xf32>, vector<8x128xf32> -> vector<8x128xf32>
    %73 = arith.addf %71, %72 : vector<8x128xf32>
    %74 = vector.extract_strided_slice %73 {offsets = [0, 0], sizes = [8, 96], strides = [1, 1]} : vector<8x128xf32> to vector<8x96xf32>
    %75 = arith.negf %74 : vector<8x96xf32>
    %76 = math.exp %75 : vector<8x96xf32>
    %cst_27 = arith.constant 1.000000e+00 : f32
    %77 = vector.broadcast %cst_27 : f32 to vector<8x96xf32>
    %78 = arith.addf %77, %76 : vector<8x96xf32>
    %79 = arith.divf %77, %78 : vector<8x96xf32>
    %80 = vector.extract_strided_slice %73 {offsets = [0, 96], sizes = [8, 32], strides = [1, 1]} : vector<8x128xf32> to vector<8x32xf32>
    %81 = math.tanh %80 : vector<8x32xf32>
    %82 = vector.extract_strided_slice %79 {offsets = [0, 0], sizes = [8, 32], strides = [1, 1]} : vector<8x96xf32> to vector<8x32xf32>
    %83 = vector.extract_strided_slice %79 {offsets = [0, 32], sizes = [8, 32], strides = [1, 1]} : vector<8x96xf32> to vector<8x32xf32>
    %84 = vector.extract_strided_slice %79 {offsets = [0, 64], sizes = [8, 32], strides = [1, 1]} : vector<8x96xf32> to vector<8x32xf32>
    %85 = arith.mulf %83, %62 : vector<8x32xf32>
    %86 = arith.mulf %82, %81 : vector<8x32xf32>
    %87 = arith.addf %85, %86 : vector<8x32xf32>
    %88 = math.tanh %87 : vector<8x32xf32>
    %89 = arith.mulf %84, %88 : vector<8x32xf32>
    %90 = arith.addi %10, %69 : i32
    %91 = arith.index_cast %90 : i32 to index
    %c0_28 = arith.constant 0 : index
    %92 = vector.load %arg10[%91, %c0_28] : memref<64x32xf32, #tpu.memory_space<vmem>>, vector<8x32xf32>
    tpu.vector_store %arg10[%91, %c0_28], %89 {strides = array<i32>} : memref<64x32xf32, #tpu.memory_space<vmem>>, vector<8x32xf32>,
    %c3_i32 = arith.constant 3 : i32
    %c8_i32_29 = arith.constant 8 : i32
    %93 = arith.muli %c3_i32, %c8_i32_29 : i32
    %94 = tpu.assume_multiple %93, 8 : i32
    %95 = arith.index_cast %94 : i32 to index
    %c0_30 = arith.constant 0 : index
    %96 = vector.load %arg9[%95, %c0_30] : memref<64x128xf32, #tpu.memory_space<vmem>>, vector<8x128xf32>
    %cst_31 = arith.constant dense<0.000000e+00> : vector<8x128xf32>
    %97 = tpu.matmul %89, %2, %cst_31 {dimension_numbers = #tpu.dot_dimension_numbers<[1], [0], [0], [1], [0, 0, 1, 1], [], []>} : vector<8x32xf32>, vector<32x128xf32>, vector<8x128xf32> -> vector<8x128xf32>
    %98 = arith.addf %96, %97 : vector<8x128xf32>
    %99 = vector.extract_strided_slice %98 {offsets = [0, 0], sizes = [8, 96], strides = [1, 1]} : vector<8x128xf32> to vector<8x96xf32>
    %100 = arith.negf %99 : vector<8x96xf32>
    %101 = math.exp %100 : vector<8x96xf32>
    %cst_32 = arith.constant 1.000000e+00 : f32
    %102 = vector.broadcast %cst_32 : f32 to vector<8x96xf32>
    %103 = arith.addf %102, %101 : vector<8x96xf32>
    %104 = arith.divf %102, %103 : vector<8x96xf32>
    %105 = vector.extract_strided_slice %98 {offsets = [0, 96], sizes = [8, 32], strides = [1, 1]} : vector<8x128xf32> to vector<8x32xf32>
    %106 = math.tanh %105 : vector<8x32xf32>
    %107 = vector.extract_strided_slice %104 {offsets = [0, 0], sizes = [8, 32], strides = [1, 1]} : vector<8x96xf32> to vector<8x32xf32>
    %108 = vector.extract_strided_slice %104 {offsets = [0, 32], sizes = [8, 32], strides = [1, 1]} : vector<8x96xf32> to vector<8x32xf32>
    %109 = vector.extract_strided_slice %104 {offsets = [0, 64], sizes = [8, 32], strides = [1, 1]} : vector<8x96xf32> to vector<8x32xf32>
    %110 = arith.mulf %108, %87 : vector<8x32xf32>
    %111 = arith.mulf %107, %106 : vector<8x32xf32>
    %112 = arith.addf %110, %111 : vector<8x32xf32>
    %113 = math.tanh %112 : vector<8x32xf32>
    %114 = arith.mulf %109, %113 : vector<8x32xf32>
    %115 = arith.addi %10, %94 : i32
    %116 = arith.index_cast %115 : i32 to index
    %c0_33 = arith.constant 0 : index
    %117 = vector.load %arg10[%116, %c0_33] : memref<64x32xf32, #tpu.memory_space<vmem>>, vector<8x32xf32>
    tpu.vector_store %arg10[%116, %c0_33], %114 {strides = array<i32>} : memref<64x32xf32, #tpu.memory_space<vmem>>, vector<8x32xf32>,
    %c4_i32 = arith.constant 4 : i32
    %c8_i32_34 = arith.constant 8 : i32
    %118 = arith.muli %c4_i32, %c8_i32_34 : i32
    %119 = tpu.assume_multiple %118, 8 : i32
    %120 = arith.index_cast %119 : i32 to index
    %c0_35 = arith.constant 0 : index
    %121 = vector.load %arg9[%120, %c0_35] : memref<64x128xf32, #tpu.memory_space<vmem>>, vector<8x128xf32>
    %cst_36 = arith.constant dense<0.000000e+00> : vector<8x128xf32>
    %122 = tpu.matmul %114, %2, %cst_36 {dimension_numbers = #tpu.dot_dimension_numbers<[1], [0], [0], [1], [0, 0, 1, 1], [], []>} : vector<8x32xf32>, vector<32x128xf32>, vector<8x128xf32> -> vector<8x128xf32>
    %123 = arith.addf %121, %122 : vector<8x128xf32>
    %124 = vector.extract_strided_slice %123 {offsets = [0, 0], sizes = [8, 96], strides = [1, 1]} : vector<8x128xf32> to vector<8x96xf32>
    %125 = arith.negf %124 : vector<8x96xf32>
    %126 = math.exp %125 : vector<8x96xf32>
    %cst_37 = arith.constant 1.000000e+00 : f32
    %127 = vector.broadcast %cst_37 : f32 to vector<8x96xf32>
    %128 = arith.addf %127, %126 : vector<8x96xf32>
    %129 = arith.divf %127, %128 : vector<8x96xf32>
    %130 = vector.extract_strided_slice %123 {offsets = [0, 96], sizes = [8, 32], strides = [1, 1]} : vector<8x128xf32> to vector<8x32xf32>
    %131 = math.tanh %130 : vector<8x32xf32>
    %132 = vector.extract_strided_slice %129 {offsets = [0, 0], sizes = [8, 32], strides = [1, 1]} : vector<8x96xf32> to vector<8x32xf32>
    %133 = vector.extract_strided_slice %129 {offsets = [0, 32], sizes = [8, 32], strides = [1, 1]} : vector<8x96xf32> to vector<8x32xf32>
    %134 = vector.extract_strided_slice %129 {offsets = [0, 64], sizes = [8, 32], strides = [1, 1]} : vector<8x96xf32> to vector<8x32xf32>
    %135 = arith.mulf %133, %112 : vector<8x32xf32>
    %136 = arith.mulf %132, %131 : vector<8x32xf32>
    %137 = arith.addf %135, %136 : vector<8x32xf32>
    %138 = math.tanh %137 : vector<8x32xf32>
    %139 = arith.mulf %134, %138 : vector<8x32xf32>
    %140 = arith.addi %10, %119 : i32
    %141 = arith.index_cast %140 : i32 to index
    %c0_38 = arith.constant 0 : index
    %142 = vector.load %arg10[%141, %c0_38] : memref<64x32xf32, #tpu.memory_space<vmem>>, vector<8x32xf32>
    tpu.vector_store %arg10[%141, %c0_38], %139 {strides = array<i32>} : memref<64x32xf32, #tpu.memory_space<vmem>>, vector<8x32xf32>,
    %c5_i32 = arith.constant 5 : i32
    %c8_i32_39 = arith.constant 8 : i32
    %143 = arith.muli %c5_i32, %c8_i32_39 : i32
    %144 = tpu.assume_multiple %143, 8 : i32
    %145 = arith.index_cast %144 : i32 to index
    %c0_40 = arith.constant 0 : index
    %146 = vector.load %arg9[%145, %c0_40] : memref<64x128xf32, #tpu.memory_space<vmem>>, vector<8x128xf32>
    %cst_41 = arith.constant dense<0.000000e+00> : vector<8x128xf32>
    %147 = tpu.matmul %139, %2, %cst_41 {dimension_numbers = #tpu.dot_dimension_numbers<[1], [0], [0], [1], [0, 0, 1, 1], [], []>} : vector<8x32xf32>, vector<32x128xf32>, vector<8x128xf32> -> vector<8x128xf32>
    %148 = arith.addf %146, %147 : vector<8x128xf32>
    %149 = vector.extract_strided_slice %148 {offsets = [0, 0], sizes = [8, 96], strides = [1, 1]} : vector<8x128xf32> to vector<8x96xf32>
    %150 = arith.negf %149 : vector<8x96xf32>
    %151 = math.exp %150 : vector<8x96xf32>
    %cst_42 = arith.constant 1.000000e+00 : f32
    %152 = vector.broadcast %cst_42 : f32 to vector<8x96xf32>
    %153 = arith.addf %152, %151 : vector<8x96xf32>
    %154 = arith.divf %152, %153 : vector<8x96xf32>
    %155 = vector.extract_strided_slice %148 {offsets = [0, 96], sizes = [8, 32], strides = [1, 1]} : vector<8x128xf32> to vector<8x32xf32>
    %156 = math.tanh %155 : vector<8x32xf32>
    %157 = vector.extract_strided_slice %154 {offsets = [0, 0], sizes = [8, 32], strides = [1, 1]} : vector<8x96xf32> to vector<8x32xf32>
    %158 = vector.extract_strided_slice %154 {offsets = [0, 32], sizes = [8, 32], strides = [1, 1]} : vector<8x96xf32> to vector<8x32xf32>
    %159 = vector.extract_strided_slice %154 {offsets = [0, 64], sizes = [8, 32], strides = [1, 1]} : vector<8x96xf32> to vector<8x32xf32>
    %160 = arith.mulf %158, %137 : vector<8x32xf32>
    %161 = arith.mulf %157, %156 : vector<8x32xf32>
    %162 = arith.addf %160, %161 : vector<8x32xf32>
    %163 = math.tanh %162 : vector<8x32xf32>
    %164 = arith.mulf %159, %163 : vector<8x32xf32>
    %165 = arith.addi %10, %144 : i32
    %166 = arith.index_cast %165 : i32 to index
    %c0_43 = arith.constant 0 : index
    %167 = vector.load %arg10[%166, %c0_43] : memref<64x32xf32, #tpu.memory_space<vmem>>, vector<8x32xf32>
    tpu.vector_store %arg10[%166, %c0_43], %164 {strides = array<i32>} : memref<64x32xf32, #tpu.memory_space<vmem>>, vector<8x32xf32>,
    %c6_i32 = arith.constant 6 : i32
    %c8_i32_44 = arith.constant 8 : i32
    %168 = arith.muli %c6_i32, %c8_i32_44 : i32
    %169 = tpu.assume_multiple %168, 8 : i32
    %170 = arith.index_cast %169 : i32 to index
    %c0_45 = arith.constant 0 : index
    %171 = vector.load %arg9[%170, %c0_45] : memref<64x128xf32, #tpu.memory_space<vmem>>, vector<8x128xf32>
    %cst_46 = arith.constant dense<0.000000e+00> : vector<8x128xf32>
    %172 = tpu.matmul %164, %2, %cst_46 {dimension_numbers = #tpu.dot_dimension_numbers<[1], [0], [0], [1], [0, 0, 1, 1], [], []>} : vector<8x32xf32>, vector<32x128xf32>, vector<8x128xf32> -> vector<8x128xf32>
    %173 = arith.addf %171, %172 : vector<8x128xf32>
    %174 = vector.extract_strided_slice %173 {offsets = [0, 0], sizes = [8, 96], strides = [1, 1]} : vector<8x128xf32> to vector<8x96xf32>
    %175 = arith.negf %174 : vector<8x96xf32>
    %176 = math.exp %175 : vector<8x96xf32>
    %cst_47 = arith.constant 1.000000e+00 : f32
    %177 = vector.broadcast %cst_47 : f32 to vector<8x96xf32>
    %178 = arith.addf %177, %176 : vector<8x96xf32>
    %179 = arith.divf %177, %178 : vector<8x96xf32>
    %180 = vector.extract_strided_slice %173 {offsets = [0, 96], sizes = [8, 32], strides = [1, 1]} : vector<8x128xf32> to vector<8x32xf32>
    %181 = math.tanh %180 : vector<8x32xf32>
    %182 = vector.extract_strided_slice %179 {offsets = [0, 0], sizes = [8, 32], strides = [1, 1]} : vector<8x96xf32> to vector<8x32xf32>
    %183 = vector.extract_strided_slice %179 {offsets = [0, 32], sizes = [8, 32], strides = [1, 1]} : vector<8x96xf32> to vector<8x32xf32>
    %184 = vector.extract_strided_slice %179 {offsets = [0, 64], sizes = [8, 32], strides = [1, 1]} : vector<8x96xf32> to vector<8x32xf32>
    %185 = arith.mulf %183, %162 : vector<8x32xf32>
    %186 = arith.mulf %182, %181 : vector<8x32xf32>
    %187 = arith.addf %185, %186 : vector<8x32xf32>
    %188 = math.tanh %187 : vector<8x32xf32>
    %189 = arith.mulf %184, %188 : vector<8x32xf32>
    %190 = arith.addi %10, %169 : i32
    %191 = arith.index_cast %190 : i32 to index
    %c0_48 = arith.constant 0 : index
    %192 = vector.load %arg10[%191, %c0_48] : memref<64x32xf32, #tpu.memory_space<vmem>>, vector<8x32xf32>
    tpu.vector_store %arg10[%191, %c0_48], %189 {strides = array<i32>} : memref<64x32xf32, #tpu.memory_space<vmem>>, vector<8x32xf32>,
    %c7_i32 = arith.constant 7 : i32
    %c8_i32_49 = arith.constant 8 : i32
    %193 = arith.muli %c7_i32, %c8_i32_49 : i32
    %194 = tpu.assume_multiple %193, 8 : i32
    %195 = arith.index_cast %194 : i32 to index
    %c0_50 = arith.constant 0 : index
    %196 = vector.load %arg9[%195, %c0_50] : memref<64x128xf32, #tpu.memory_space<vmem>>, vector<8x128xf32>
    %cst_51 = arith.constant dense<0.000000e+00> : vector<8x128xf32>
    %197 = tpu.matmul %189, %2, %cst_51 {dimension_numbers = #tpu.dot_dimension_numbers<[1], [0], [0], [1], [0, 0, 1, 1], [], []>} : vector<8x32xf32>, vector<32x128xf32>, vector<8x128xf32> -> vector<8x128xf32>
    %198 = arith.addf %196, %197 : vector<8x128xf32>
    %199 = vector.extract_strided_slice %198 {offsets = [0, 0], sizes = [8, 96], strides = [1, 1]} : vector<8x128xf32> to vector<8x96xf32>
    %200 = arith.negf %199 : vector<8x96xf32>
    %201 = math.exp %200 : vector<8x96xf32>
    %cst_52 = arith.constant 1.000000e+00 : f32
    %202 = vector.broadcast %cst_52 : f32 to vector<8x96xf32>
    %203 = arith.addf %202, %201 : vector<8x96xf32>
    %204 = arith.divf %202, %203 : vector<8x96xf32>
    %205 = vector.extract_strided_slice %198 {offsets = [0, 96], sizes = [8, 32], strides = [1, 1]} : vector<8x128xf32> to vector<8x32xf32>
    %206 = math.tanh %205 : vector<8x32xf32>
    %207 = vector.extract_strided_slice %204 {offsets = [0, 0], sizes = [8, 32], strides = [1, 1]} : vector<8x96xf32> to vector<8x32xf32>
    %208 = vector.extract_strided_slice %204 {offsets = [0, 32], sizes = [8, 32], strides = [1, 1]} : vector<8x96xf32> to vector<8x32xf32>
    %209 = vector.extract_strided_slice %204 {offsets = [0, 64], sizes = [8, 32], strides = [1, 1]} : vector<8x96xf32> to vector<8x32xf32>
    %210 = arith.mulf %208, %187 : vector<8x32xf32>
    %211 = arith.mulf %207, %206 : vector<8x32xf32>
    %212 = arith.addf %210, %211 : vector<8x32xf32>
    %213 = math.tanh %212 : vector<8x32xf32>
    %214 = arith.mulf %209, %213 : vector<8x32xf32>
    %215 = arith.addi %10, %194 : i32
    %216 = arith.index_cast %215 : i32 to index
    %c0_53 = arith.constant 0 : index
    %217 = vector.load %arg10[%216, %c0_53] : memref<64x32xf32, #tpu.memory_space<vmem>>, vector<8x32xf32>
    tpu.vector_store %arg10[%216, %c0_53], %214 {strides = array<i32>} : memref<64x32xf32, #tpu.memory_space<vmem>>, vector<8x32xf32>,
    %c8_i32_54 = arith.constant 8 : i32
    %c1_i32_55 = arith.constant 1 : i32
    %c0_56 = arith.constant 0 : index
    %c0_57 = arith.constant 0 : index
    %218 = vector.load %arg3[%c0_56, %c0_57] : memref<32x128xf32, #tpu.memory_space<vmem>>, vector<32x128xf32>
    %c1 = arith.constant 1 : index
    %c0_58 = arith.constant 0 : index
    %c0_59 = arith.constant 0 : index
    %219 = vector.load %arg4[%c1, %c0_58, %c0_59] : memref<2x32x128xf32, #tpu.memory_space<vmem>>, vector<1x32x128xf32>
    %220 = vector.shape_cast %219 : vector<1x32x128xf32> to vector<32x128xf32>
    %c1_60 = arith.constant 1 : index
    %c0_61 = arith.constant 0 : index
    %c0_62 = arith.constant 0 : index
    %221 = vector.load %arg5[%c1_60, %c0_61, %c0_62] : memref<2x1x128xf32, #tpu.memory_space<vmem>>, vector<1x1x128xf32>
    %222 = vector.shape_cast %221 : vector<1x1x128xf32> to vector<1x128xf32>
    %cst_63 = arith.constant 0.000000e+00 : f32
    %223 = vector.broadcast %cst_63 : f32 to vector<8x32xf32>
    %cst_64 = arith.constant 0.000000e+00 : f32
    %224 = vector.broadcast %cst_64 : f32 to vector<8x32xf32>
    %c0_i32_65 = arith.constant 0 : i32
    %c64_i32_66 = arith.constant 64 : i32
    %225 = arith.muli %c0_i32_65, %c64_i32_66 : i32
    %226 = tpu.assume_multiple %225, 64 : i32
    %227 = arith.index_cast %226 : i32 to index
    %c0_67 = arith.constant 0 : index
    %228 = vector.load %arg10[%227, %c0_67] : memref<64x32xf32, #tpu.memory_space<vmem>>, vector<64x32xf32>
    %cst_68 = arith.constant dense<0.000000e+00> : vector<64x128xf32>
    %229 = tpu.matmul %228, %218, %cst_68 {dimension_numbers = #tpu.dot_dimension_numbers<[1], [0], [0], [1], [0, 0, 1, 1], [], []>} : vector<64x32xf32>, vector<32x128xf32>, vector<64x128xf32> -> vector<64x128xf32>
    %230 = vector.broadcast %222 : vector<1x128xf32> to vector<64x128xf32>
    %231 = arith.addf %229, %230 : vector<64x128xf32>
    %c0_69 = arith.constant 0 : index
    %c0_70 = arith.constant 0 : index
    %232 = vector.load %arg9[%c0_69, %c0_70] : memref<64x128xf32, #tpu.memory_space<vmem>>, vector<64x128xf32>
    tpu.vector_store %arg9[%c0_69, %c0_70], %231 {strides = array<i32>} : memref<64x128xf32, #tpu.memory_space<vmem>>, vector<64x128xf32>,
    %c0_i32_71 = arith.constant 0 : i32
    %c8_i32_72 = arith.constant 8 : i32
    %233 = arith.muli %c0_i32_71, %c8_i32_72 : i32
    %234 = tpu.assume_multiple %233, 8 : i32
    %235 = arith.index_cast %234 : i32 to index
    %c0_73 = arith.constant 0 : index
    %236 = vector.load %arg9[%235, %c0_73] : memref<64x128xf32, #tpu.memory_space<vmem>>, vector<8x128xf32>
    %cst_74 = arith.constant dense<0.000000e+00> : vector<8x128xf32>
    %237 = tpu.matmul %223, %220, %cst_74 {dimension_numbers = #tpu.dot_dimension_numbers<[1], [0], [0], [1], [0, 0, 1, 1], [], []>} : vector<8x32xf32>, vector<32x128xf32>, vector<8x128xf32> -> vector<8x128xf32>
    %238 = arith.addf %236, %237 : vector<8x128xf32>
    %239 = vector.extract_strided_slice %238 {offsets = [0, 0], sizes = [8, 96], strides = [1, 1]} : vector<8x128xf32> to vector<8x96xf32>
    %240 = arith.negf %239 : vector<8x96xf32>
    %241 = math.exp %240 : vector<8x96xf32>
    %cst_75 = arith.constant 1.000000e+00 : f32
    %242 = vector.broadcast %cst_75 : f32 to vector<8x96xf32>
    %243 = arith.addf %242, %241 : vector<8x96xf32>
    %244 = arith.divf %242, %243 : vector<8x96xf32>
    %245 = vector.extract_strided_slice %238 {offsets = [0, 96], sizes = [8, 32], strides = [1, 1]} : vector<8x128xf32> to vector<8x32xf32>
    %246 = math.tanh %245 : vector<8x32xf32>
    %247 = vector.extract_strided_slice %244 {offsets = [0, 0], sizes = [8, 32], strides = [1, 1]} : vector<8x96xf32> to vector<8x32xf32>
    %248 = vector.extract_strided_slice %244 {offsets = [0, 32], sizes = [8, 32], strides = [1, 1]} : vector<8x96xf32> to vector<8x32xf32>
    %249 = vector.extract_strided_slice %244 {offsets = [0, 64], sizes = [8, 32], strides = [1, 1]} : vector<8x96xf32> to vector<8x32xf32>
    %250 = arith.mulf %248, %224 : vector<8x32xf32>
    %251 = arith.mulf %247, %246 : vector<8x32xf32>
    %252 = arith.addf %250, %251 : vector<8x32xf32>
    %253 = math.tanh %252 : vector<8x32xf32>
    %254 = arith.mulf %249, %253 : vector<8x32xf32>
    %c1_i32_76 = arith.constant 1 : i32
    %c8_i32_77 = arith.constant 8 : i32
    %255 = arith.muli %c1_i32_76, %c8_i32_77 : i32
    %256 = tpu.assume_multiple %255, 8 : i32
    %257 = arith.index_cast %256 : i32 to index
    %c0_78 = arith.constant 0 : index
    %258 = vector.load %arg9[%257, %c0_78] : memref<64x128xf32, #tpu.memory_space<vmem>>, vector<8x128xf32>
    %cst_79 = arith.constant dense<0.000000e+00> : vector<8x128xf32>
    %259 = tpu.matmul %254, %220, %cst_79 {dimension_numbers = #tpu.dot_dimension_numbers<[1], [0], [0], [1], [0, 0, 1, 1], [], []>} : vector<8x32xf32>, vector<32x128xf32>, vector<8x128xf32> -> vector<8x128xf32>
    %260 = arith.addf %258, %259 : vector<8x128xf32>
    %261 = vector.extract_strided_slice %260 {offsets = [0, 0], sizes = [8, 96], strides = [1, 1]} : vector<8x128xf32> to vector<8x96xf32>
    %262 = arith.negf %261 : vector<8x96xf32>
    %263 = math.exp %262 : vector<8x96xf32>
    %cst_80 = arith.constant 1.000000e+00 : f32
    %264 = vector.broadcast %cst_80 : f32 to vector<8x96xf32>
    %265 = arith.addf %264, %263 : vector<8x96xf32>
    %266 = arith.divf %264, %265 : vector<8x96xf32>
    %267 = vector.extract_strided_slice %260 {offsets = [0, 96], sizes = [8, 32], strides = [1, 1]} : vector<8x128xf32> to vector<8x32xf32>
    %268 = math.tanh %267 : vector<8x32xf32>
    %269 = vector.extract_strided_slice %266 {offsets = [0, 0], sizes = [8, 32], strides = [1, 1]} : vector<8x96xf32> to vector<8x32xf32>
    %270 = vector.extract_strided_slice %266 {offsets = [0, 32], sizes = [8, 32], strides = [1, 1]} : vector<8x96xf32> to vector<8x32xf32>
    %271 = vector.extract_strided_slice %266 {offsets = [0, 64], sizes = [8, 32], strides = [1, 1]} : vector<8x96xf32> to vector<8x32xf32>
    %272 = arith.mulf %270, %252 : vector<8x32xf32>
    %273 = arith.mulf %269, %268 : vector<8x32xf32>
    %274 = arith.addf %272, %273 : vector<8x32xf32>
    %275 = math.tanh %274 : vector<8x32xf32>
    %276 = arith.mulf %271, %275 : vector<8x32xf32>
    %c2_i32_81 = arith.constant 2 : i32
    %c8_i32_82 = arith.constant 8 : i32
    %277 = arith.muli %c2_i32_81, %c8_i32_82 : i32
    %278 = tpu.assume_multiple %277, 8 : i32
    %279 = arith.index_cast %278 : i32 to index
    %c0_83 = arith.constant 0 : index
    %280 = vector.load %arg9[%279, %c0_83] : memref<64x128xf32, #tpu.memory_space<vmem>>, vector<8x128xf32>
    %cst_84 = arith.constant dense<0.000000e+00> : vector<8x128xf32>
    %281 = tpu.matmul %276, %220, %cst_84 {dimension_numbers = #tpu.dot_dimension_numbers<[1], [0], [0], [1], [0, 0, 1, 1], [], []>} : vector<8x32xf32>, vector<32x128xf32>, vector<8x128xf32> -> vector<8x128xf32>
    %282 = arith.addf %280, %281 : vector<8x128xf32>
    %283 = vector.extract_strided_slice %282 {offsets = [0, 0], sizes = [8, 96], strides = [1, 1]} : vector<8x128xf32> to vector<8x96xf32>
    %284 = arith.negf %283 : vector<8x96xf32>
    %285 = math.exp %284 : vector<8x96xf32>
    %cst_85 = arith.constant 1.000000e+00 : f32
    %286 = vector.broadcast %cst_85 : f32 to vector<8x96xf32>
    %287 = arith.addf %286, %285 : vector<8x96xf32>
    %288 = arith.divf %286, %287 : vector<8x96xf32>
    %289 = vector.extract_strided_slice %282 {offsets = [0, 96], sizes = [8, 32], strides = [1, 1]} : vector<8x128xf32> to vector<8x32xf32>
    %290 = math.tanh %289 : vector<8x32xf32>
    %291 = vector.extract_strided_slice %288 {offsets = [0, 0], sizes = [8, 32], strides = [1, 1]} : vector<8x96xf32> to vector<8x32xf32>
    %292 = vector.extract_strided_slice %288 {offsets = [0, 32], sizes = [8, 32], strides = [1, 1]} : vector<8x96xf32> to vector<8x32xf32>
    %293 = vector.extract_strided_slice %288 {offsets = [0, 64], sizes = [8, 32], strides = [1, 1]} : vector<8x96xf32> to vector<8x32xf32>
    %294 = arith.mulf %292, %274 : vector<8x32xf32>
    %295 = arith.mulf %291, %290 : vector<8x32xf32>
    %296 = arith.addf %294, %295 : vector<8x32xf32>
    %297 = math.tanh %296 : vector<8x32xf32>
    %298 = arith.mulf %293, %297 : vector<8x32xf32>
    %c3_i32_86 = arith.constant 3 : i32
    %c8_i32_87 = arith.constant 8 : i32
    %299 = arith.muli %c3_i32_86, %c8_i32_87 : i32
    %300 = tpu.assume_multiple %299, 8 : i32
    %301 = arith.index_cast %300 : i32 to index
    %c0_88 = arith.constant 0 : index
    %302 = vector.load %arg9[%301, %c0_88] : memref<64x128xf32, #tpu.memory_space<vmem>>, vector<8x128xf32>
    %cst_89 = arith.constant dense<0.000000e+00> : vector<8x128xf32>
    %303 = tpu.matmul %298, %220, %cst_89 {dimension_numbers = #tpu.dot_dimension_numbers<[1], [0], [0], [1], [0, 0, 1, 1], [], []>} : vector<8x32xf32>, vector<32x128xf32>, vector<8x128xf32> -> vector<8x128xf32>
    %304 = arith.addf %302, %303 : vector<8x128xf32>
    %305 = vector.extract_strided_slice %304 {offsets = [0, 0], sizes = [8, 96], strides = [1, 1]} : vector<8x128xf32> to vector<8x96xf32>
    %306 = arith.negf %305 : vector<8x96xf32>
    %307 = math.exp %306 : vector<8x96xf32>
    %cst_90 = arith.constant 1.000000e+00 : f32
    %308 = vector.broadcast %cst_90 : f32 to vector<8x96xf32>
    %309 = arith.addf %308, %307 : vector<8x96xf32>
    %310 = arith.divf %308, %309 : vector<8x96xf32>
    %311 = vector.extract_strided_slice %304 {offsets = [0, 96], sizes = [8, 32], strides = [1, 1]} : vector<8x128xf32> to vector<8x32xf32>
    %312 = math.tanh %311 : vector<8x32xf32>
    %313 = vector.extract_strided_slice %310 {offsets = [0, 0], sizes = [8, 32], strides = [1, 1]} : vector<8x96xf32> to vector<8x32xf32>
    %314 = vector.extract_strided_slice %310 {offsets = [0, 32], sizes = [8, 32], strides = [1, 1]} : vector<8x96xf32> to vector<8x32xf32>
    %315 = vector.extract_strided_slice %310 {offsets = [0, 64], sizes = [8, 32], strides = [1, 1]} : vector<8x96xf32> to vector<8x32xf32>
    %316 = arith.mulf %314, %296 : vector<8x32xf32>
    %317 = arith.mulf %313, %312 : vector<8x32xf32>
    %318 = arith.addf %316, %317 : vector<8x32xf32>
    %319 = math.tanh %318 : vector<8x32xf32>
    %320 = arith.mulf %315, %319 : vector<8x32xf32>
    %c4_i32_91 = arith.constant 4 : i32
    %c8_i32_92 = arith.constant 8 : i32
    %321 = arith.muli %c4_i32_91, %c8_i32_92 : i32
    %322 = tpu.assume_multiple %321, 8 : i32
    %323 = arith.index_cast %322 : i32 to index
    %c0_93 = arith.constant 0 : index
    %324 = vector.load %arg9[%323, %c0_93] : memref<64x128xf32, #tpu.memory_space<vmem>>, vector<8x128xf32>
    %cst_94 = arith.constant dense<0.000000e+00> : vector<8x128xf32>
    %325 = tpu.matmul %320, %220, %cst_94 {dimension_numbers = #tpu.dot_dimension_numbers<[1], [0], [0], [1], [0, 0, 1, 1], [], []>} : vector<8x32xf32>, vector<32x128xf32>, vector<8x128xf32> -> vector<8x128xf32>
    %326 = arith.addf %324, %325 : vector<8x128xf32>
    %327 = vector.extract_strided_slice %326 {offsets = [0, 0], sizes = [8, 96], strides = [1, 1]} : vector<8x128xf32> to vector<8x96xf32>
    %328 = arith.negf %327 : vector<8x96xf32>
    %329 = math.exp %328 : vector<8x96xf32>
    %cst_95 = arith.constant 1.000000e+00 : f32
    %330 = vector.broadcast %cst_95 : f32 to vector<8x96xf32>
    %331 = arith.addf %330, %329 : vector<8x96xf32>
    %332 = arith.divf %330, %331 : vector<8x96xf32>
    %333 = vector.extract_strided_slice %326 {offsets = [0, 96], sizes = [8, 32], strides = [1, 1]} : vector<8x128xf32> to vector<8x32xf32>
    %334 = math.tanh %333 : vector<8x32xf32>
    %335 = vector.extract_strided_slice %332 {offsets = [0, 0], sizes = [8, 32], strides = [1, 1]} : vector<8x96xf32> to vector<8x32xf32>
    %336 = vector.extract_strided_slice %332 {offsets = [0, 32], sizes = [8, 32], strides = [1, 1]} : vector<8x96xf32> to vector<8x32xf32>
    %337 = vector.extract_strided_slice %332 {offsets = [0, 64], sizes = [8, 32], strides = [1, 1]} : vector<8x96xf32> to vector<8x32xf32>
    %338 = arith.mulf %336, %318 : vector<8x32xf32>
    %339 = arith.mulf %335, %334 : vector<8x32xf32>
    %340 = arith.addf %338, %339 : vector<8x32xf32>
    %341 = math.tanh %340 : vector<8x32xf32>
    %342 = arith.mulf %337, %341 : vector<8x32xf32>
    %c5_i32_96 = arith.constant 5 : i32
    %c8_i32_97 = arith.constant 8 : i32
    %343 = arith.muli %c5_i32_96, %c8_i32_97 : i32
    %344 = tpu.assume_multiple %343, 8 : i32
    %345 = arith.index_cast %344 : i32 to index
    %c0_98 = arith.constant 0 : index
    %346 = vector.load %arg9[%345, %c0_98] : memref<64x128xf32, #tpu.memory_space<vmem>>, vector<8x128xf32>
    %cst_99 = arith.constant dense<0.000000e+00> : vector<8x128xf32>
    %347 = tpu.matmul %342, %220, %cst_99 {dimension_numbers = #tpu.dot_dimension_numbers<[1], [0], [0], [1], [0, 0, 1, 1], [], []>} : vector<8x32xf32>, vector<32x128xf32>, vector<8x128xf32> -> vector<8x128xf32>
    %348 = arith.addf %346, %347 : vector<8x128xf32>
    %349 = vector.extract_strided_slice %348 {offsets = [0, 0], sizes = [8, 96], strides = [1, 1]} : vector<8x128xf32> to vector<8x96xf32>
    %350 = arith.negf %349 : vector<8x96xf32>
    %351 = math.exp %350 : vector<8x96xf32>
    %cst_100 = arith.constant 1.000000e+00 : f32
    %352 = vector.broadcast %cst_100 : f32 to vector<8x96xf32>
    %353 = arith.addf %352, %351 : vector<8x96xf32>
    %354 = arith.divf %352, %353 : vector<8x96xf32>
    %355 = vector.extract_strided_slice %348 {offsets = [0, 96], sizes = [8, 32], strides = [1, 1]} : vector<8x128xf32> to vector<8x32xf32>
    %356 = math.tanh %355 : vector<8x32xf32>
    %357 = vector.extract_strided_slice %354 {offsets = [0, 0], sizes = [8, 32], strides = [1, 1]} : vector<8x96xf32> to vector<8x32xf32>
    %358 = vector.extract_strided_slice %354 {offsets = [0, 32], sizes = [8, 32], strides = [1, 1]} : vector<8x96xf32> to vector<8x32xf32>
    %359 = vector.extract_strided_slice %354 {offsets = [0, 64], sizes = [8, 32], strides = [1, 1]} : vector<8x96xf32> to vector<8x32xf32>
    %360 = arith.mulf %358, %340 : vector<8x32xf32>
    %361 = arith.mulf %357, %356 : vector<8x32xf32>
    %362 = arith.addf %360, %361 : vector<8x32xf32>
    %363 = math.tanh %362 : vector<8x32xf32>
    %364 = arith.mulf %359, %363 : vector<8x32xf32>
    %c6_i32_101 = arith.constant 6 : i32
    %c8_i32_102 = arith.constant 8 : i32
    %365 = arith.muli %c6_i32_101, %c8_i32_102 : i32
    %366 = tpu.assume_multiple %365, 8 : i32
    %367 = arith.index_cast %366 : i32 to index
    %c0_103 = arith.constant 0 : index
    %368 = vector.load %arg9[%367, %c0_103] : memref<64x128xf32, #tpu.memory_space<vmem>>, vector<8x128xf32>
    %cst_104 = arith.constant dense<0.000000e+00> : vector<8x128xf32>
    %369 = tpu.matmul %364, %220, %cst_104 {dimension_numbers = #tpu.dot_dimension_numbers<[1], [0], [0], [1], [0, 0, 1, 1], [], []>} : vector<8x32xf32>, vector<32x128xf32>, vector<8x128xf32> -> vector<8x128xf32>
    %370 = arith.addf %368, %369 : vector<8x128xf32>
    %371 = vector.extract_strided_slice %370 {offsets = [0, 0], sizes = [8, 96], strides = [1, 1]} : vector<8x128xf32> to vector<8x96xf32>
    %372 = arith.negf %371 : vector<8x96xf32>
    %373 = math.exp %372 : vector<8x96xf32>
    %cst_105 = arith.constant 1.000000e+00 : f32
    %374 = vector.broadcast %cst_105 : f32 to vector<8x96xf32>
    %375 = arith.addf %374, %373 : vector<8x96xf32>
    %376 = arith.divf %374, %375 : vector<8x96xf32>
    %377 = vector.extract_strided_slice %370 {offsets = [0, 96], sizes = [8, 32], strides = [1, 1]} : vector<8x128xf32> to vector<8x32xf32>
    %378 = math.tanh %377 : vector<8x32xf32>
    %379 = vector.extract_strided_slice %376 {offsets = [0, 0], sizes = [8, 32], strides = [1, 1]} : vector<8x96xf32> to vector<8x32xf32>
    %380 = vector.extract_strided_slice %376 {offsets = [0, 32], sizes = [8, 32], strides = [1, 1]} : vector<8x96xf32> to vector<8x32xf32>
    %381 = vector.extract_strided_slice %376 {offsets = [0, 64], sizes = [8, 32], strides = [1, 1]} : vector<8x96xf32> to vector<8x32xf32>
    %382 = arith.mulf %380, %362 : vector<8x32xf32>
    %383 = arith.mulf %379, %378 : vector<8x32xf32>
    %384 = arith.addf %382, %383 : vector<8x32xf32>
    %385 = math.tanh %384 : vector<8x32xf32>
    %386 = arith.mulf %381, %385 : vector<8x32xf32>
    %c7_i32_106 = arith.constant 7 : i32
    %c8_i32_107 = arith.constant 8 : i32
    %387 = arith.muli %c7_i32_106, %c8_i32_107 : i32
    %388 = tpu.assume_multiple %387, 8 : i32
    %389 = arith.index_cast %388 : i32 to index
    %c0_108 = arith.constant 0 : index
    %390 = vector.load %arg9[%389, %c0_108] : memref<64x128xf32, #tpu.memory_space<vmem>>, vector<8x128xf32>
    %cst_109 = arith.constant dense<0.000000e+00> : vector<8x128xf32>
    %391 = tpu.matmul %386, %220, %cst_109 {dimension_numbers = #tpu.dot_dimension_numbers<[1], [0], [0], [1], [0, 0, 1, 1], [], []>} : vector<8x32xf32>, vector<32x128xf32>, vector<8x128xf32> -> vector<8x128xf32>
    %392 = arith.addf %390, %391 : vector<8x128xf32>
    %393 = vector.extract_strided_slice %392 {offsets = [0, 0], sizes = [8, 96], strides = [1, 1]} : vector<8x128xf32> to vector<8x96xf32>
    %394 = arith.negf %393 : vector<8x96xf32>
    %395 = math.exp %394 : vector<8x96xf32>
    %cst_110 = arith.constant 1.000000e+00 : f32
    %396 = vector.broadcast %cst_110 : f32 to vector<8x96xf32>
    %397 = arith.addf %396, %395 : vector<8x96xf32>
    %398 = arith.divf %396, %397 : vector<8x96xf32>
    %399 = vector.extract_strided_slice %392 {offsets = [0, 96], sizes = [8, 32], strides = [1, 1]} : vector<8x128xf32> to vector<8x32xf32>
    %400 = math.tanh %399 : vector<8x32xf32>
    %401 = vector.extract_strided_slice %398 {offsets = [0, 0], sizes = [8, 32], strides = [1, 1]} : vector<8x96xf32> to vector<8x32xf32>
    %402 = vector.extract_strided_slice %398 {offsets = [0, 32], sizes = [8, 32], strides = [1, 1]} : vector<8x96xf32> to vector<8x32xf32>
    %403 = vector.extract_strided_slice %398 {offsets = [0, 64], sizes = [8, 32], strides = [1, 1]} : vector<8x96xf32> to vector<8x32xf32>
    %404 = arith.mulf %402, %384 : vector<8x32xf32>
    %405 = arith.mulf %401, %400 : vector<8x32xf32>
    %406 = arith.addf %404, %405 : vector<8x32xf32>
    %407 = math.tanh %406 : vector<8x32xf32>
    %408 = arith.mulf %403, %407 : vector<8x32xf32>
    %c8_i32_111 = arith.constant 8 : i32
    %c1_i32_112 = arith.constant 1 : i32
    %c0_113 = arith.constant 0 : index
    %c0_114 = arith.constant 0 : index
    %409 = vector.load %arg6[%c0_113, %c0_114] : memref<1x32xf32, #tpu.memory_space<vmem>>, vector<1x32xf32>
    %410 = vector.broadcast %409 : vector<1x32xf32> to vector<8x32xf32>
    %411 = arith.mulf %408, %410 : vector<8x32xf32>
    %cst_115 = arith.constant dense<0.000000e+00> : vector<8xf32>
    %412 = vector.multi_reduction <add>, %411, %cst_115 [1] : vector<8x32xf32> to vector<8xf32>
    %413 = vector.shape_cast %412 : vector<8xf32> to vector<8x1xf32>
    %c0_116 = arith.constant 0 : index
    %c0_117 = arith.constant 0 : index
    %414 = vector.load %arg7[%c0_116, %c0_117] : memref<1x1xf32, #tpu.memory_space<vmem>>, vector<1x1xf32>
    %415 = vector.broadcast %414 : vector<1x1xf32> to vector<8x1xf32>
    %416 = arith.addf %413, %415 : vector<8x1xf32>
    %c0_118 = arith.constant 0 : index
    %c0_119 = arith.constant 0 : index
    %417 = vector.load %arg8[%c0_118, %c0_119] : memref<8x1xf32, #tpu.memory_space<vmem>>, vector<8x1xf32>
    tpu.vector_store %arg8[%c0_118, %c0_119], %416 {strides = array<i32>} : memref<8x1xf32, #tpu.memory_space<vmem>>, vector<8x1xf32>,
    return
  }
  func.func @transform_0(%arg0: i32) -> (i32, i32, i32) {
    %c0_i32 = arith.constant 0 : i32
    %c0_i32_0 = arith.constant 0 : i32
    %c0_i32_1 = arith.constant 0 : i32
    return %c0_i32, %arg0, %c0_i32_0 : i32, i32, i32
  }
  func.func @transform_1(%arg0: i32) -> (i32, i32) {
    %c0_i32 = arith.constant 0 : i32
    %c0_i32_0 = arith.constant 0 : i32
    %c0_i32_1 = arith.constant 0 : i32
    return %c0_i32, %c0_i32_0 : i32, i32
  }
  func.func @transform_2(%arg0: i32) -> (i32, i32) {
    %c0_i32 = arith.constant 0 : i32
    %c0_i32_0 = arith.constant 0 : i32
    %c0_i32_1 = arith.constant 0 : i32
    return %c0_i32, %c0_i32_0 : i32, i32
  }
  func.func @transform_3(%arg0: i32) -> (i32, i32, i32) {
    %c0_i32 = arith.constant 0 : i32
    %c0_i32_0 = arith.constant 0 : i32
    %c0_i32_1 = arith.constant 0 : i32
    %c0_i32_2 = arith.constant 0 : i32
    return %c0_i32, %c0_i32_0, %c0_i32_1 : i32, i32, i32
  }
  func.func @transform_4(%arg0: i32) -> (i32, i32, i32) {
    %c0_i32 = arith.constant 0 : i32
    %c0_i32_0 = arith.constant 0 : i32
    %c0_i32_1 = arith.constant 0 : i32
    %c0_i32_2 = arith.constant 0 : i32
    return %c0_i32, %c0_i32_0, %c0_i32_1 : i32, i32, i32
  }
  func.func @transform_5(%arg0: i32) -> (i32, i32) {
    %c0_i32 = arith.constant 0 : i32
    %c0_i32_0 = arith.constant 0 : i32
    %c0_i32_1 = arith.constant 0 : i32
    return %c0_i32, %c0_i32_0 : i32, i32
  }
  func.func @transform_6(%arg0: i32) -> (i32, i32) {
    %c0_i32 = arith.constant 0 : i32
    %c0_i32_0 = arith.constant 0 : i32
    %c0_i32_1 = arith.constant 0 : i32
    return %c0_i32, %c0_i32_0 : i32, i32
  }
  func.func @transform_7(%arg0: i32) -> (i32, i32) {
    %c0_i32 = arith.constant 0 : i32
    %c0_i32_0 = arith.constant 0 : i32
    return %arg0, %c0_i32 : i32, i32
  }
}

</mosaic_0001>

<bundles_post_ra>
// kernel: lstm_forward_pallas.1
= control target key start
LH: loop header
LB: loop body
LE: loop exit
PB: predicated region body
PF: predicated region fallthrough
CT: control target
= control target key end

     0   :  { %vm51_vm0 = vcmask 130048   ;;  %v2651_v0 = vmov 0.0|0.0   ;;  %vm2652_vm1 = vmmov 0   ;;  %v2653_v4 = vmov 0.0   ;;  %s2654_s18 = smov 32   ;;  %s2655_s19 = smov 64   ;;  %s3044_s1 = inlined_call_operand.vmem [shape: f32[16,128], index: 1, kind: input, shape index: {}]   ;;  %s3045_s3 = inlined_call_operand.vmem [shape: f32[2,32,128], index: 3, kind: input, shape index: {}]   ;;  %s3046_s0 = inlined_call_operand.vmem [shape: f32[8,8,16], index: 0, kind: input, shape index: {}]   ;;  %s3047_s4 = inlined_call_operand.vmem [shape: f32[2,1,128], index: 4, kind: input, shape index: {}]   ;;  %s3048_s2 = inlined_call_operand.vmem [shape: f32[32,128], index: 2, kind: input, shape index: {}]   ;;  %s3049_s5 = inlined_call_operand.vmem [shape: f32[1,32], index: 5, kind: input, shape index: {}]   ;;  %s3050_s6 = inlined_call_operand.<no memory space> [shape: f32[1,1], index: 6, kind: input, shape index: {}]   ;;  %s3051_s7 = inlined_call_operand.vmem [shape: f32[8,1], index: 7, kind: output, shape index: {}]  }
   0x1   :  { %2414 = vmatprep.subr.bf16.mxu1 %v2651_v0  ;;  %v28_v1 = vld [vmem:[%s3044_s1] sm:$0xff]  ;;  %v29_v2 = vld [vmem:[%s3044_s1 + $0x8] sm:$0xff]  ;;  %2222 = vmatprep.mubr.msk.f32.mxu1 %vm2652_vm1, %v2653_v4  ;;  %v32_v9 = vld [vmem:[%s3045_s3 + $0x10] sm:$0xff]  ;;  %vm190_vm2 = vcmask 261120   ;;  %vm2028_vm3 = vcmask 7168  }
   0x2   :  { %v30_v3 = vld [vmem:[%s3045_s3] sm:$0xff]  ;;  %v2410_v5 = vpack.c.bf16 %v29_v2, %v28_v1  ;;  %v31_v6 = vld [vmem:[%s3045_s3 + $0x8] sm:$0xff]  ;;  %v33_v10 = vld [vmem:[%s3045_s3 + $0x18] sm:$0xff] }
   0x3   :  { %v37_v7 = vld [vmem:[%s3046_s0] sm:$0xff]  ;;  %v2714_v8 = vpack.c.bf16 %v31_v6, %v30_v3  ;;  %v38_v11 = vld [vmem:[%s3046_s0 + $0x8] sm:$0xff]  ;;  %v2727_v12 = vpack.c.bf16 %v33_v10, %v32_v9  ;;  %v39_v48 = vld [vmem:[%s3046_s0 + $0x10] sm:$0xff] }
   0x4   :  { %2202 = vmatprep.mubr.msk.f32.mxu0 %vm51_vm0, %v37_v7  ;;  %2411 = vmatprep.subr.bf16.mxu0 %v2410_v5  ;;  %v2748_v13 = vld [vmem:[%s3047_s4] ss:$0 sm:$0xff]  ;;  %v40_v49 = vld [vmem:[%s3046_s0 + $0x18] sm:$0xff]  ;;  %v42_v51 = vld [vmem:[%s3046_s0 + $0x28] sm:$0xff] }
   0x5   :  { %2416 = vmatpush3.bf16.msra.mxu1 %v2714_v8  ;;  %2413 = vmatpush3.bf16.msra.mxu0 %v2410_v5  ;;  %v41_v50 = vld [vmem:[%s3046_s0 + $0x20] sm:$0xff]  ;;  %v43_v52 = vld [vmem:[%s3046_s0 + $0x30] sm:$0xff]  ;;  %v44_v53 = vld [vmem:[%s3046_s0 + $0x38] sm:$0xff] }
   0x6   :  { %2417 = vmatprep.subr.bf16.mxu1 %v2651_v0  ;;  %2426 = vmatprep.subr.bf16.mxu0 %v2651_v0 }
   0x8   :  { %2203 = vmatmul.mubr.msk.f32.vlgmr.msra.gmra.mrb[0].mxu0 %vm51_vm0, %v38_v11 }
   0x9   :  { %2419 = vmatpush3.bf16.msra.mxu1 %v2727_v12  ;;  %2428 = vmatpush3.bf16.msra.mxu0 %v2714_v8 }
   0xa   :  { %2420 = vmatprep.subr.bf16.mxu1 %v2651_v0  ;;  %2429 = vmatprep.subr.bf16.mxu0 %v2651_v0 }
   0xb   :  { %2205 = vmatprep.mubr.msk.f32.mxu0 %vm51_vm0, %v39_v48 }
   0xc   :  { %2223 = vmatmul.mubr.f32.vlgmr.msra.gmra.mrb[0].mxu1 %v2653_v4  ;;  %2206 = vmatmul.mubr.msk.f32.gmra.mrb[2].mxu0 %vm51_vm0, %v40_v49 }
   0xd   :  { %2422 = vmatpush3.bf16.msra.mxu1 %v2714_v8  ;;  %2233 = vmatprep.mubr.msk.f32.mxu1 %vm2652_vm1, %v2653_v4 }
   0xe   :  { %2423 = vmatprep.subr.bf16.mxu1 %v2651_v0  ;;  %2431 = vmatpush3.bf16.msra.mxu0 %v2727_v12 }
   0xf   :  { %2438 = vmatprep.subr.bf16.mxu0 %v2651_v0  ;;  %2208 = vmatprep.mubr.msk.f32.mxu0 %vm51_vm0, %v41_v50 }
  0x10   :  { %2209 = vmatmul.mubr.msk.f32.gmra.mrb[4].mxu0 %vm51_vm0, %v42_v51 }
  0x11   :  { %2425 = vmatpush3.bf16.msra.mxu1 %v2727_v12  ;;  %2211 = vmatprep.mubr.msk.f32.mxu0 %vm51_vm0, %v43_v52 }
  0x12   :  { %2432 = vmatprep.subr.bf16.mxu1 %v2651_v0 }
  0x14   :  { %2212 = vmatmul.mubr.msk.f32.gmra.mrb[6].mxu0 %vm51_vm0, %v44_v53 }
  0x15   :  { %2244 = vmatprep.mubr.msk.f32.mxu0 %vm2652_vm1, %v2653_v4 }
  0xdb   :  { %v2204_v14 = vpop.f32.mrb[0].mxu0 }
  0xdc   :  { %v142_v15 = vpop.f32.mrb[1].mxu0  ;;  %v148_v34 = vadd.f32 %v2204_v14, %v2748_v13 }
  0xdd   :  { %v143_v16 = vadd.f32 %v2748_v13, %v142_v15 }
  0xdf   :  { %v260_v17 = vpop.f32.mrb[0].mxu1  ;;  %v2207_v57 = vpop.f32.mrb[2].mxu0 }
  0xe0   :  { %v264_v18 = vadd.f32 %v260_v17, %v143_v16  ;;  %v2224_v19 = vpop.f32.mrb[1].mxu1  ;;  %v152_v58 = vpop.f32.mrb[3].mxu0 }
  0xe1   :  { %v153_v1 = vadd.f32 %v2748_v13, %v152_v58 }
  0xe2   :  { %2523 = vtanh.f32 %v264_v18  ;;  %v2050_v21 = vmul.f32 -1.442695, %v264_v18 }
  0xe3   :  { %v2794_v59 = vpop.f32.mrb[4].mxu0 }
  0xe4   :  { %2525 = vpow2.f32 %v2050_v21  ;;  %v2796_v60 = vpop.f32.mrb[5].mxu0 }
  0xe7   :  { %v2798_v61 = vpop.f32.mrb[6].mxu0 }
  0xe8   :  { %v2800_v62 = vpop.f32.mrb[7].mxu0 }
  0xec   :  { %v2524_v20 = vpop.eup %2523 }
  0xed   :  { %274 = vrot.lane.b32.xlu0 %v2524_v20, %s2654_s18 }
  0xee   :  { %v2526_v22 = vpop.eup %2525 }
  0xef   :  { %v268_v23 = vadd.f32 1.0, %v2526_v22 }
  0xf1   :  { %2527 = vrcp.f32 %v268_v23  ;;  %v158_v23 = vadd.f32 %v2207_v57, %v2748_v13 }
  0xfb   :  { %v2528_v24 = vpop.eup %2527 }
  0xfc   :  { %v272_v27 = vmul.f32 0.0, %v2528_v24 }
 0x15f   :  { %v275_v25 = vpop.permute.xlu0 %274 }
 0x160   :  { %v277_v26 = vmul.f32 %v2528_v24, %v275_v25 }
 0x162   :  { %279 = vrot.lane.b32.xlu0 %v277_v26, %s2654_s18 }
 0x1d4   :  { %v280_v28 = vpop.permute.xlu0 %279 }
 0x1d5   :  { %v282_v29 = vadd.f32 %v280_v28, %v272_v27 }
 0x1d7   :  { %2529 = vtanh.f32 %v282_v29 }
 0x1e1   :  { %v2530_v30 = vpop.eup %2529 }
 0x1e2   :  { %285 = vrot.lane.b32.xlu1 %v2530_v30, %s2654_s18 }
 0x254   :  { %v286_v31 = vpop.permute.xlu1 %285 }
 0x255   :  { %v288_v32 = vmul.f32 %v2528_v24, %v286_v31 }
 0x257   :  { %291 = vrot.lane.b32.xlu1 %v288_v32, %s2655_s19 }
 0x2c9   :  { %v292_v33 = vpop.permute.xlu1 %291 }
 0x2ca   :  { %295 = vst.msk [vmem:[#allocation3] sm:$0xff] %vm190_vm2, %v292_v33  ;;  %2234 = vmatmul.mubr.msk.f32.vlgmr.msra.gmra.mrb[2].mxu1 %vm190_vm2, %v292_v33 }
 0x2cb   :  { %2434 = vmatpush3.bf16.msra.mxu1 %v2714_v8  ;;  %2255 = vmatprep.mubr.msk.f32.mxu1 %vm2652_vm1, %v2653_v4 }
 0x2cc   :  { %2435 = vmatprep.subr.bf16.mxu1 %v2651_v0 }
 0x2cf   :  { %2437 = vmatpush3.bf16.msra.mxu1 %v2727_v12 }
 0x2d0   :  { %2444 = vmatprep.subr.bf16.mxu1 %v2651_v0 }
 0x39d   :  { %v366_v35 = vpop.f32.mrb[2].mxu1 }
 0x39e   :  { %v370_v36 = vadd.f32 %v366_v35, %v148_v34  ;;  %v2235_v37 = vpop.f32.mrb[3].mxu1 }
 0x3a0   :  { %2531 = vtanh.f32 %v370_v36  ;;  %v2052_v39 = vmul.f32 -1.442695, %v370_v36 }
 0x3a2   :  { %2533 = vpow2.f32 %v2052_v39 }
 0x3aa   :  { %v2532_v38 = vpop.eup %2531 }
 0x3ab   :  { %380 = vrot.lane.b32.xlu0 %v2532_v38, %s2654_s18 }
 0x3ac   :  { %v2534_v40 = vpop.eup %2533 }
 0x3ad   :  { %v374_v41 = vadd.f32 1.0, %v2534_v40 }
 0x3af   :  { %2535 = vrcp.f32 %v374_v41  ;;  %v163_v41 = vadd.f32 %v2748_v13, %v2796_v60  ;;  %v168_v60 = vadd.f32 %v2794_v59, %v2748_v13 }
 0x3b9   :  { %v2536_v42 = vpop.eup %2535 }
 0x3ba   :  { %v378_v45 = vmul.f32 %v2536_v42, %v282_v29 }
 0x41d   :  { %v381_v43 = vpop.permute.xlu0 %380 }
 0x41e   :  { %v383_v44 = vmul.f32 %v2536_v42, %v381_v43 }
 0x420   :  { %385 = vrot.lane.b32.xlu1 %v383_v44, %s2654_s18 }
 0x492   :  { %v386_v46 = vpop.permute.xlu1 %385 }
 0x493   :  { %v388_v47 = vadd.f32 %v386_v46, %v378_v45 }
 0x495   :  { %2537 = vtanh.f32 %v388_v47 }
 0x49f   :  { %v2538_v54 = vpop.eup %2537 }
 0x4a0   :  { %391 = vrot.lane.b32.xlu0 %v2538_v54, %s2654_s18 }
 0x512   :  { %v392_v55 = vpop.permute.xlu0 %391 }
 0x513   :  { %v394_v56 = vmul.f32 %v2536_v42, %v392_v55 }
 0x515   :  { %397 = vrot.lane.b32.xlu1 %v394_v56, %s2655_s19 }
 0x587   :  { %v398_v63 = vpop.permute.xlu1 %397 }
 0x588   :  { %401 = vst.msk [vmem:[#allocation3 + $0x8] sm:$0xff] %vm190_vm2, %v398_v63  ;;  %2245 = vmatmul.mubr.msk.f32.vlgmr.msra.gmra.mrb[8].mxu0 %vm190_vm2, %v398_v63 }
 0x589   :  { %2440 = vmatpush3.bf16.msra.mxu0 %v2714_v8  ;;  %2266 = vmatprep.mubr.msk.f32.mxu0 %vm2652_vm1, %v2653_v4 }
 0x58a   :  { %2441 = vmatprep.subr.bf16.mxu0 %v2651_v0 }
 0x58d   :  { %2443 = vmatpush3.bf16.msra.mxu0 %v2727_v12 }
 0x58e   :  { %2450 = vmatprep.subr.bf16.mxu0 %v2651_v0 }
 0x65b   :  { %v472_v2 = vpop.f32.mrb[8].mxu0 }
 0x65c   :  { %v476_v3 = vadd.f32 %v472_v2, %v153_v1  ;;  %v2246_v5 = vpop.f32.mrb[9].mxu0 }
 0x65e   :  { %2539 = vtanh.f32 %v476_v3  ;;  %v2054_v7 = vmul.f32 -1.442695, %v476_v3 }
 0x660   :  { %2541 = vpow2.f32 %v2054_v7 }
 0x668   :  { %v2540_v6 = vpop.eup %2539 }
 0x669   :  { %486 = vrot.lane.b32.xlu0 %v2540_v6, %s2654_s18 }
 0x66a   :  { %v2542_v9 = vpop.eup %2541 }
 0x66b   :  { %v480_v10 = vadd.f32 1.0, %v2542_v9 }
 0x66d   :  { %2543 = vrcp.f32 %v480_v10 }
 0x677   :  { %v2544_v11 = vpop.eup %2543 }
 0x678   :  { %v484_v16 = vmul.f32 %v2544_v11, %v388_v47 }
 0x6db   :  { %v487_v14 = vpop.permute.xlu0 %486 }
 0x6dc   :  { %v489_v15 = vmul.f32 %v2544_v11, %v487_v14  ;;  %v1038_v14 = vld [vmem:[%s3048_s2] sm:$0xff] }
 0x6de   :  { %491 = vrot.lane.b32.xlu1 %v489_v15, %s2654_s18  ;;  %v1039_v15 = vld [vmem:[%s3048_s2 + $0x8] sm:$0xff] }
 0x750   :  { %v492_v17 = vpop.permute.xlu1 %491 }
 0x751   :  { %v494_v18 = vadd.f32 %v492_v17, %v484_v16  ;;  %v2462_v16 = vpack.c.bf16 %v1039_v15, %v1038_v14 }
 0x753   :  { %2545 = vtanh.f32 %v494_v18 }
 0x75d   :  { %v2546_v19 = vpop.eup %2545 }
 0x75e   :  { %497 = vrot.lane.b32.xlu0 %v2546_v19, %s2654_s18 }
 0x7d0   :  { %v498_v20 = vpop.permute.xlu0 %497 }
 0x7d1   :  { %v500_v21 = vmul.f32 %v2544_v11, %v498_v20  ;;  %v1040_v20 = vld [vmem:[%s3048_s2 + $0x10] sm:$0xff] }
 0x7d3   :  { %503 = vrot.lane.b32.xlu1 %v500_v21, %s2655_s19  ;;  %v1041_v21 = vld [vmem:[%s3048_s2 + $0x18] sm:$0xff] }
 0x845   :  { %v504_v22 = vpop.permute.xlu1 %503 }
 0x846   :  { %507 = vst.msk [vmem:[#allocation3 + $0x10] sm:$0xff] %vm190_vm2, %v504_v22  ;;  %2256 = vmatmul.mubr.msk.f32.vlgmr.msra.gmra.mrb[4].mxu1 %vm190_vm2, %v504_v22  ;;  %v2466_v22 = vpack.c.bf16 %v1041_v21, %v1040_v20 }
 0x847   :  { %2446 = vmatpush3.bf16.msra.mxu1 %v2714_v8  ;;  %2277 = vmatprep.mubr.msk.f32.mxu1 %vm2652_vm1, %v2653_v4 }
 0x848   :  { %2447 = vmatprep.subr.bf16.mxu1 %v2651_v0 }
 0x84b   :  { %2449 = vmatpush3.bf16.msra.mxu1 %v2727_v12 }
 0x84c   :  { %2456 = vmatprep.subr.bf16.mxu1 %v2651_v0 }
 0x919   :  { %v578_v24 = vpop.f32.mrb[4].mxu1 }
 0x91a   :  { %v582_v25 = vadd.f32 %v578_v24, %v158_v23  ;;  %v2257_v26 = vpop.f32.mrb[5].mxu1  ;;  %v1049_v24 = vld [vmem:[#allocation3] sm:$0xff] }
 0x91b   :  { %v1051_v26 = vld [vmem:[#allocation3 + $0x10] sm:$0xff] }
 0x91c   :  { %2547 = vtanh.f32 %v582_v25  ;;  %v2056_v28 = vmul.f32 -1.442695, %v582_v25  ;;  %v1050_v25 = vld [vmem:[#allocation3 + $0x8] sm:$0xff] }
 0x91e   :  { %2549 = vpow2.f32 %v2056_v28 }
 0x926   :  { %v2548_v27 = vpop.eup %2547 }
 0x927   :  { %592 = vrot.lane.b32.xlu0 %v2548_v27, %s2654_s18 }
 0x928   :  { %v2550_v29 = vpop.eup %2549 }
 0x929   :  { %v586_v30 = vadd.f32 1.0, %v2550_v29 }
 0x92b   :  { %2551 = vrcp.f32 %v586_v30  ;;  %v173_v30 = vadd.f32 %v2748_v13, %v2800_v62 }
 0x935   :  { %v2552_v31 = vpop.eup %2551 }
 0x936   :  { %v590_v34 = vmul.f32 %v2552_v31, %v494_v18 }
 0x999   :  { %v593_v32 = vpop.permute.xlu0 %592 }
 0x99a   :  { %v595_v33 = vmul.f32 %v2552_v31, %v593_v32 }
 0x99c   :  { %597 = vrot.lane.b32.xlu1 %v595_v33, %s2654_s18 }
 0xa0e   :  { %v598_v35 = vpop.permute.xlu1 %597 }
 0xa0f   :  { %v600_v36 = vadd.f32 %v598_v35, %v590_v34 }
 0xa11   :  { %2553 = vtanh.f32 %v600_v36 }
 0xa1b   :  { %v2554_v37 = vpop.eup %2553 }
 0xa1c   :  { %603 = vrot.lane.b32.xlu0 %v2554_v37, %s2654_s18 }
 0xa8e   :  { %v604_v38 = vpop.permute.xlu0 %603 }
 0xa8f   :  { %v606_v39 = vmul.f32 %v2552_v31, %v604_v38 }
 0xa91   :  { %609 = vrot.lane.b32.xlu1 %v606_v39, %s2655_s19 }
 0xb03   :  { %v610_v40 = vpop.permute.xlu1 %609 }
 0xb04   :  { %613 = vst.msk [vmem:[#allocation3 + $0x18] sm:$0xff] %vm190_vm2, %v610_v40  ;;  %2267 = vmatmul.mubr.msk.f32.vlgmr.msra.gmra.mrb[10].mxu0 %vm190_vm2, %v610_v40 }
 0xb05   :  { %2452 = vmatpush3.bf16.msra.mxu0 %v2714_v8  ;;  %2288 = vmatprep.mubr.msk.f32.mxu0 %vm2652_vm1, %v2653_v4 }
 0xb06   :  { %2453 = vmatprep.subr.bf16.mxu0 %v2651_v0 }
 0xb09   :  { %2455 = vmatpush3.bf16.msra.mxu0 %v2727_v12 }
 0xb0a   :  { %2463 = vmatprep.subr.bf16.mxu0 %v2462_v16 }
 0xb0b   :  { %v1052_v27 = vld [vmem:[#allocation3 + $0x18] sm:$0xff] }
 0xbd7   :  { %v684_v42 = vpop.f32.mrb[10].mxu0 }
 0xbd8   :  { %v688_v43 = vadd.f32 %v684_v42, %v163_v41  ;;  %v2268_v44 = vpop.f32.mrb[11].mxu0 }
 0xbda   :  { %2555 = vtanh.f32 %v688_v43  ;;  %v2058_v46 = vmul.f32 -1.442695, %v688_v43 }
 0xbdc   :  { %2557 = vpow2.f32 %v2058_v46 }
 0xbe4   :  { %v2556_v45 = vpop.eup %2555 }
 0xbe5   :  { %698 = vrot.lane.b32.xlu0 %v2556_v45, %s2654_s18 }
 0xbe6   :  { %v2558_v47 = vpop.eup %2557 }
 0xbe7   :  { %v692_v48 = vadd.f32 1.0, %v2558_v47 }
 0xbe9   :  { %2559 = vrcp.f32 %v692_v48 }
 0xbf3   :  { %v2560_v49 = vpop.eup %2559 }
 0xbf4   :  { %v696_v52 = vmul.f32 %v2560_v49, %v600_v36 }
 0xc57   :  { %v699_v50 = vpop.permute.xlu0 %698 }
 0xc58   :  { %v701_v51 = vmul.f32 %v2560_v49, %v699_v50  ;;  %v2065_v50 = vld [vmem:[%s3045_s3 + $0x20] sm:$0xff] }
 0xc5a   :  { %703 = vrot.lane.b32.xlu1 %v701_v51, %s2654_s18  ;;  %v2066_v51 = vld [vmem:[%s3045_s3 + $0x28] sm:$0xff] }
 0xccc   :  { %v704_v53 = vpop.permute.xlu1 %703 }
 0xccd   :  { %v706_v54 = vadd.f32 %v704_v53, %v696_v52  ;;  %v2900_v52 = vpack.c.bf16 %v2066_v51, %v2065_v50  ;;  %v2067_v53 = vld [vmem:[%s3045_s3 + $0x30] sm:$0xff] }
 0xccf   :  { %2561 = vtanh.f32 %v706_v54 }
 0xcd9   :  { %v2562_v55 = vpop.eup %2561 }
 0xcda   :  { %709 = vrot.lane.b32.xlu0 %v2562_v55, %s2654_s18 }
 0xd4c   :  { %v710_v56 = vpop.permute.xlu0 %709 }
 0xd4d   :  { %v712_v57 = vmul.f32 %v2560_v49, %v710_v56 }
 0xd4f   :  { %715 = vrot.lane.b32.xlu1 %v712_v57, %s2655_s19 }
 0xdc1   :  { %v716_v58 = vpop.permute.xlu1 %715 }
 0xdc2   :  { %719 = vst.msk [vmem:[#allocation3 + $0x20] sm:$0xff] %vm190_vm2, %v716_v58  ;;  %2278 = vmatmul.mubr.msk.f32.vlgmr.msra.gmra.mrb[6].mxu1 %vm190_vm2, %v716_v58 }
 0xdc3   :  { %2458 = vmatpush3.bf16.msra.mxu1 %v2714_v8  ;;  %2299 = vmatprep.mubr.msk.f32.mxu1 %vm2652_vm1, %v2653_v4 }
 0xdc4   :  { %2459 = vmatprep.subr.bf16.mxu1 %v2651_v0 }
 0xdc7   :  { %2461 = vmatpush3.bf16.msra.mxu1 %v2727_v12 }
 0xdc8   :  { %2470 = vmatprep.subr.bf16.mxu1 %v2651_v0 }
 0xdc9   :  { %v1053_v28 = vld [vmem:[#allocation3 + $0x20] sm:$0xff] }
 0xe95   :  { %v790_v63 = vpop.f32.mrb[6].mxu1 }
 0xe96   :  { %v794_v1 = vadd.f32 %v790_v63, %v168_v60  ;;  %v2279_v2 = vpop.f32.mrb[7].mxu1  ;;  %v178_v63 = vadd.f32 %v2798_v61, %v2748_v13 }
 0xe98   :  { %2563 = vtanh.f32 %v794_v1  ;;  %v2060_v8 = vmul.f32 -1.442695, %v794_v1 }
 0xe9a   :  { %2565 = vpow2.f32 %v2060_v8  ;;  %v2936_v8 = vld [vmem:[%s3047_s4 + $0x1] ss:$0 sm:$0xff] }
 0xea2   :  { %v2564_v3 = vpop.eup %2563 }
 0xea3   :  { %804 = vrot.lane.b32.xlu0 %v2564_v3, %s2654_s18 }
 0xea4   :  { %v2566_v5 = vpop.eup %2565 }
 0xea5   :  { %v798_v6 = vadd.f32 1.0, %v2566_v5 }
 0xea7   :  { %2567 = vrcp.f32 %v798_v6 }
 0xeb1   :  { %v2568_v7 = vpop.eup %2567 }
 0xeb2   :  { %v802_v10 = vmul.f32 %v2568_v7, %v706_v54  ;;  %v2068_v54 = vld [vmem:[%s3045_s3 + $0x38] sm:$0xff] }
 0xeb3   :  { %v2910_v55 = vpack.c.bf16 %v2068_v54, %v2067_v53 }
 0xf15   :  { %v805_v9 = vpop.permute.xlu0 %804 }
 0xf16   :  { %v807_v12 = vmul.f32 %v2568_v7, %v805_v9 }
 0xf18   :  { %809 = vrot.lane.b32.xlu1 %v807_v12, %s2654_s18 }
 0xf8a   :  { %v810_v11 = vpop.permute.xlu1 %809 }
 0xf8b   :  { %v812_v59 = vadd.f32 %v810_v11, %v802_v10 }
 0xf8d   :  { %2569 = vtanh.f32 %v812_v59 }
 0xf97   :  { %v2570_v17 = vpop.eup %2569 }
 0xf98   :  { %815 = vrot.lane.b32.xlu0 %v2570_v17, %s2654_s18 }
0x100a   :  { %v816_v18 = vpop.permute.xlu0 %815 }
0x100b   :  { %v818_v19 = vmul.f32 %v2568_v7, %v816_v18 }
0x100d   :  { %821 = vrot.lane.b32.xlu1 %v818_v19, %s2655_s19 }
0x107f   :  { %v822_v23 = vpop.permute.xlu1 %821 }
0x1080   :  { %825 = vst.msk [vmem:[#allocation3 + $0x28] sm:$0xff] %vm190_vm2, %v822_v23  ;;  %2289 = vmatmul.mubr.msk.f32.vlgmr.msra.gmra.mrb[12].mxu0 %vm190_vm2, %v822_v23 }
0x1081   :  { %2465 = vmatpush3.bf16.msra.mxu0 %v2462_v16  ;;  %2310 = vmatprep.mubr.msk.f32.mxu0 %vm190_vm2, %v1049_v24 }
0x1082   :  { %2467 = vmatprep.subr.bf16.mxu0 %v2466_v22 }
0x1085   :  { %2469 = vmatpush3.bf16.msra.mxu0 %v2466_v22 }
0x1086   :  { %2482 = vmatprep.subr.bf16.mxu0 %v2651_v0 }
0x1087   :  { %v1054_v29 = vld [vmem:[#allocation3 + $0x28] sm:$0xff] }
0x1088   :  { %2311 = vmatmul.mubr.msk.f32.vlgmr.msra.gmra.mrb[14].mxu0 %vm190_vm2, %v1050_v25 }
0x1089   :  { %2313 = vmatprep.mubr.msk.f32.mxu0 %vm190_vm2, %v1051_v26  ;;  %2484 = vmatpush3.bf16.msra.mxu0 %v2900_v52 }
0x108a   :  { %2485 = vmatprep.subr.bf16.mxu0 %v2651_v0 }
0x108c   :  { %2314 = vmatmul.mubr.msk.f32.gmra.mrb[16].mxu0 %vm190_vm2, %v1052_v27 }
0x108d   :  { %2316 = vmatprep.mubr.msk.f32.mxu0 %vm190_vm2, %v1053_v28  ;;  %2487 = vmatpush3.bf16.msra.mxu0 %v2910_v55 }
0x108e   :  { %2494 = vmatprep.subr.bf16.mxu0 %v2651_v0 }
0x1090   :  { %2317 = vmatmul.mubr.msk.f32.gmra.mrb[18].mxu0 %vm190_vm2, %v1054_v29 }
0x1153   :  { %v896_v31 = vpop.f32.mrb[12].mxu0 }
0x1154   :  { %v900_v32 = vadd.f32 %v896_v31, %v173_v30  ;;  %v2290_v33 = vpop.f32.mrb[13].mxu0 }
0x1156   :  { %2571 = vtanh.f32 %v900_v32  ;;  %v2062_v41 = vmul.f32 -1.442695, %v900_v32 }
0x1158   :  { %2573 = vpow2.f32 %v2062_v41 }
0x115b   :  { %v2878_v34 = vpop.f32.mrb[14].mxu0 }
0x115c   :  { %v1153_v35 = vpop.f32.mrb[15].mxu0 }
0x115d   :  { %v1154_v5 = vadd.f32 %v2936_v8, %v1153_v35 }
0x115f   :  { %v2880_v36 = vpop.f32.mrb[16].mxu0 }
0x1160   :  { %v2572_v37 = vpop.eup %2571  ;;  %v2882_v38 = vpop.f32.mrb[17].mxu0 }
0x1161   :  { %910 = vrot.lane.b32.xlu0 %v2572_v37, %s2654_s18  ;;  %v1159_v37 = vadd.f32 %v2878_v34, %v2936_v8 }
0x1162   :  { %v2574_v62 = vpop.eup %2573 }
0x1163   :  { %v2885_v39 = vpop.f32.mrb[18].mxu0  ;;  %v904_v42 = vadd.f32 1.0, %v2574_v62 }
0x1164   :  { %v2887_v40 = vpop.f32.mrb[19].mxu0 }
0x1165   :  { %2575 = vrcp.f32 %v904_v42 }
0x116f   :  { %v2576_v43 = vpop.eup %2575 }
0x1170   :  { %v908_v46 = vmul.f32 %v2576_v43, %v812_v59 }
0x11d3   :  { %v911_v44 = vpop.permute.xlu0 %910 }
0x11d4   :  { %v913_v45 = vmul.f32 %v2576_v43, %v911_v44 }
0x11d6   :  { %915 = vrot.lane.b32.xlu1 %v913_v45, %s2654_s18 }
0x1248   :  { %v916_v47 = vpop.permute.xlu1 %915 }
0x1249   :  { %v2890_v48 = vadd.f32 %v916_v47, %v908_v46 }
0x124b   :  { %2577 = vtanh.f32 %v2890_v48 }
0x1255   :  { %v2578_v49 = vpop.eup %2577 }
0x1256   :  { %921 = vrot.lane.b32.xlu0 %v2578_v49, %s2654_s18 }
0x12c8   :  { %v922_v56 = vpop.permute.xlu0 %921 }
0x12c9   :  { %v924_v57 = vmul.f32 %v2576_v43, %v922_v56 }
0x12cb   :  { %927 = vrot.lane.b32.xlu1 %v924_v57, %s2655_s19 }
0x133d   :  { %v928_v58 = vpop.permute.xlu1 %927 }
0x133e   :  { %931 = vst.msk [vmem:[#allocation3 + $0x30] sm:$0xff] %vm190_vm2, %v928_v58  ;;  %2300 = vmatmul.mubr.msk.f32.vlgmr.msra.gmra.mrb[8].mxu1 %vm190_vm2, %v928_v58 }
0x133f   :  { %2472 = vmatpush3.bf16.msra.mxu1 %v2900_v52  ;;  %2330 = vmatprep.mubr.msk.f32.mxu1 %vm2652_vm1, %v2653_v4 }
0x1340   :  { %2473 = vmatprep.subr.bf16.mxu1 %v2651_v0 }
0x1343   :  { %2475 = vmatpush3.bf16.msra.mxu1 %v2910_v55 }
0x1344   :  { %2476 = vmatprep.subr.bf16.mxu1 %v2651_v0 }
0x1345   :  { %v1055_v60 = vld [vmem:[#allocation3 + $0x30] sm:$0xff] }
0x1346   :  { %2331 = vmatmul.mubr.f32.vlgmr.msra.gmra.mrb[10].mxu1 %v2653_v4  ;;  %2319 = vmatprep.mubr.msk.f32.mxu0 %vm190_vm2, %v1055_v60 }
0x1347   :  { %2478 = vmatpush3.bf16.msra.mxu1 %v2900_v52  ;;  %2341 = vmatprep.mubr.msk.f32.mxu1 %vm2652_vm1, %v2653_v4 }
0x1348   :  { %2479 = vmatprep.subr.bf16.mxu1 %v2651_v0 }
0x134b   :  { %2481 = vmatpush3.bf16.msra.mxu1 %v2910_v55 }
0x134c   :  { %2488 = vmatprep.subr.bf16.mxu1 %v2651_v0 }
0x1411   :  { %v1002_v1 = vpop.f32.mrb[8].mxu1 }
0x1412   :  { %v1006_v2 = vadd.f32 %v1002_v1, %v178_v63  ;;  %v2301_v3 = vpop.f32.mrb[9].mxu1 }
0x1414   :  { %v2064_v20 = vmul.f32 -1.442695, %v1006_v2 }
0x1419   :  { %v1267_v6 = vpop.f32.mrb[10].mxu1 }
0x141a   :  { %v1271_v7 = vadd.f32 %v1267_v6, %v1154_v5  ;;  %v2332_v9 = vpop.f32.mrb[11].mxu1 }
0x141c   :  { %2579 = vtanh.f32 %v1271_v7  ;;  %v2079_v10 = vmul.f32 -1.442695, %v1271_v7 }
0x141e   :  { %2581 = vpow2.f32 %v2079_v10 }
0x1426   :  { %v2580_v12 = vpop.eup %2579 }
0x1427   :  { %1281 = vrot.lane.b32.xlu0 %v2580_v12, %s2654_s18 }
0x1428   :  { %v2582_v13 = vpop.eup %2581 }
0x1429   :  { %v1275_v61 = vadd.f32 1.0, %v2582_v13 }
0x142b   :  { %2583 = vrcp.f32 %v1275_v61 }
0x1435   :  { %v2584_v11 = vpop.eup %2583 }
0x1436   :  { %v1279_v15 = vmul.f32 0.0, %v2584_v11 }
0x1499   :  { %v1282_v59 = vpop.permute.xlu0 %1281 }
0x149a   :  { %v1284_v14 = vmul.f32 %v2584_v11, %v1282_v59 }
0x149c   :  { %1286 = vrot.lane.b32.xlu1 %v1284_v14, %s2654_s18 }
0x150e   :  { %v1287_v16 = vpop.permute.xlu1 %1286 }
0x150f   :  { %v1289_v17 = vadd.f32 %v1287_v16, %v1279_v15 }
0x1511   :  { %2585 = vtanh.f32 %v1289_v17 }
0x1512   :  { %2587 = vtanh.f32 %v1006_v2  ;;  %v1164_v2 = vadd.f32 %v2936_v8, %v2882_v38 }
0x1513   :  { %2589 = vpow2.f32 %v2064_v20 }
0x151b   :  { %v2586_v18 = vpop.eup %2585 }
0x151c   :  { %1292 = vrot.lane.b32.xlu0 %v2586_v18, %s2654_s18  ;;  %v2588_v19 = vpop.eup %2587 }
0x151d   :  { %v2590_v21 = vpop.eup %2589 }
0x151e   :  { %v1010_v22 = vadd.f32 1.0, %v2590_v21 }
0x1520   :  { %1016 = vrot.lane.b32.xlu0 %v2588_v19, %s2654_s18  ;;  %2591 = vrcp.f32 %v1010_v22  ;;  %v1169_v19 = vadd.f32 %v2880_v36, %v2936_v8 }
0x152a   :  { %v2592_v25 = vpop.eup %2591 }
0x152b   :  { %v1014_v29 = vmul.f32 %v2592_v25, %v2890_v48 }
0x158e   :  { %v1293_v23 = vpop.permute.xlu0 %1292 }
0x158f   :  { %v1295_v24 = vmul.f32 %v2584_v11, %v1293_v23 }
0x1591   :  { %1298 = vrot.lane.b32.xlu1 %v1295_v24, %s2655_s19 }
0x1592   :  { %v1017_v26 = vpop.permute.xlu0 %1016 }
0x1593   :  { %v1019_v27 = vmul.f32 %v2592_v25, %v1017_v26 }
0x1595   :  { %1021 = vrot.lane.b32.xlu0 %v1019_v27, %s2654_s18 }
0x1603   :  { %v1299_v28 = vpop.permute.xlu1 %1298 }
0x1604   :  { %2342 = vmatmul.mubr.msk.f32.vlgmr.msra.gmra.mrb[12].mxu1 %vm190_vm2, %v1299_v28 }
0x1605   :  { %2490 = vmatpush3.bf16.msra.mxu1 %v2900_v52  ;;  %2363 = vmatprep.mubr.msk.f32.mxu1 %vm2652_vm1, %v2653_v4 }
0x1606   :  { %2491 = vmatprep.subr.bf16.mxu1 %v2651_v0 }
0x1607   :  { %v1022_v30 = vpop.permute.xlu0 %1021 }
0x1608   :  { %v1024_v31 = vadd.f32 %v1022_v30, %v1014_v29 }
0x1609   :  { %2493 = vmatpush3.bf16.msra.mxu1 %v2910_v55 }
0x160a   :  { %2593 = vtanh.f32 %v1024_v31  ;;  %2500 = vmatprep.subr.bf16.mxu1 %v2651_v0 }
0x1614   :  { %v2594_v32 = vpop.eup %2593 }
0x1615   :  { %1027 = vrot.lane.b32.xlu0 %v2594_v32, %s2654_s18 }
0x1687   :  { %v1028_v33 = vpop.permute.xlu0 %1027 }
0x1688   :  { %v1030_v35 = vmul.f32 %v2592_v25, %v1028_v33 }
0x168a   :  { %1033 = vrot.lane.b32.xlu0 %v1030_v35, %s2655_s19 }
0x16d7   :  { %v1368_v41 = vpop.f32.mrb[12].mxu1 }
0x16d8   :  { %v1372_v62 = vadd.f32 %v1368_v41, %v1159_v37  ;;  %v2343_v42 = vpop.f32.mrb[13].mxu1  ;;  %v1174_v41 = vadd.f32 %v2936_v8, %v2887_v40 }
0x16da   :  { %2595 = vtanh.f32 %v1372_v62  ;;  %v2081_v46 = vmul.f32 -1.442695, %v1372_v62 }
0x16dc   :  { %2597 = vpow2.f32 %v2081_v46 }
0x16e4   :  { %v2596_v43 = vpop.eup %2595 }
0x16e5   :  { %1382 = vrot.lane.b32.xlu1 %v2596_v43, %s2654_s18 }
0x16e6   :  { %v2598_v47 = vpop.eup %2597 }
0x16e7   :  { %v1376_v34 = vadd.f32 1.0, %v2598_v47 }
0x16e9   :  { %2599 = vrcp.f32 %v1376_v34 }
0x16f3   :  { %v2600_v48 = vpop.eup %2599 }
0x16f4   :  { %v1380_v51 = vmul.f32 %v2600_v48, %v1289_v17 }
0x16fc   :  { %v1034_v44 = vpop.permute.xlu0 %1033 }
0x16fd   :  { %1037 = vst.msk [vmem:[#allocation3 + $0x38] sm:$0xff] %vm190_vm2, %v1034_v44 }
0x1704   :  { %v1056_v45 = vld [vmem:[#allocation3 + $0x38] sm:$0xff] }
0x1705   :  { %2320 = vmatmul.mubr.msk.f32.gmra.mrb[20].mxu0 %vm190_vm2, %v1056_v45 }
0x1706   :  { %2352 = vmatprep.mubr.msk.f32.mxu0 %vm2652_vm1, %v2653_v4 }
0x1757   :  { %v1383_v49 = vpop.permute.xlu1 %1382 }
0x1758   :  { %v1385_v50 = vmul.f32 %v2600_v48, %v1383_v49 }
0x175a   :  { %1387 = vrot.lane.b32.xlu1 %v1385_v50, %s2654_s18 }
0x17cc   :  { %v1388_v53 = vpop.permute.xlu1 %1387 }
0x17cd   :  { %v1390_v54 = vadd.f32 %v1388_v53, %v1380_v51 }
0x17cf   :  { %2601 = vtanh.f32 %v1390_v54 }
0x17d8   :  { %v2963_v56 = vpop.f32.mrb[20].mxu0 }
0x17d9   :  { %v2602_v57 = vpop.eup %2601  ;;  %v2965_v58 = vpop.f32.mrb[21].mxu0 }
0x17da   :  { %1393 = vrot.lane.b32.xlu1 %v2602_v57, %s2654_s18 }
0x184c   :  { %v1394_v60 = vpop.permute.xlu1 %1393 }
0x184d   :  { %v1396_v63 = vmul.f32 %v2600_v48, %v1394_v60 }
0x184f   :  { %1399 = vrot.lane.b32.xlu1 %v1396_v63, %s2655_s19  ;;  %v1179_v63 = vadd.f32 %v2885_v39, %v2936_v8 }
0x18c1   :  { %v1400_v1 = vpop.permute.xlu1 %1399 }
0x18c2   :  { %2353 = vmatmul.mubr.msk.f32.vlgmr.msra.gmra.mrb[22].mxu0 %vm190_vm2, %v1400_v1 }
0x18c3   :  { %2496 = vmatpush3.bf16.msra.mxu0 %v2900_v52  ;;  %2374 = vmatprep.mubr.msk.f32.mxu0 %vm2652_vm1, %v2653_v4 }
0x18c4   :  { %2497 = vmatprep.subr.bf16.mxu0 %v2651_v0 }
0x18c7   :  { %2499 = vmatpush3.bf16.msra.mxu0 %v2910_v55 }
0x18c8   :  { %2506 = vmatprep.subr.bf16.mxu0 %v2651_v0 }
0x1995   :  { %v1469_v3 = vpop.f32.mrb[22].mxu0 }
0x1996   :  { %v1473_v5 = vadd.f32 %v1469_v3, %v1164_v2  ;;  %v2354_v6 = vpop.f32.mrb[23].mxu0 }
0x1998   :  { %2603 = vtanh.f32 %v1473_v5  ;;  %v2083_v9 = vmul.f32 -1.442695, %v1473_v5 }
0x199a   :  { %2605 = vpow2.f32 %v2083_v9 }
0x19a2   :  { %v2604_v7 = vpop.eup %2603 }
0x19a3   :  { %1483 = vrot.lane.b32.xlu0 %v2604_v7, %s2654_s18 }
0x19a4   :  { %v2606_v12 = vpop.eup %2605 }
0x19a5   :  { %v1477_v10 = vadd.f32 1.0, %v2606_v12 }
0x19a7   :  { %2607 = vrcp.f32 %v1477_v10 }
0x19b1   :  { %v2608_v13 = vpop.eup %2607 }
0x19b2   :  { %v1481_v59 = vmul.f32 %v2608_v13, %v1390_v54 }
0x1a15   :  { %v1484_v61 = vpop.permute.xlu0 %1483 }
0x1a16   :  { %v1486_v11 = vmul.f32 %v2608_v13, %v1484_v61 }
0x1a18   :  { %1488 = vrot.lane.b32.xlu1 %v1486_v11, %s2654_s18 }
0x1a8a   :  { %v1489_v14 = vpop.permute.xlu1 %1488 }
0x1a8b   :  { %v1491_v38 = vadd.f32 %v1489_v14, %v1481_v59  ;;  %v1184_v59 = vadd.f32 %v2936_v8, %v2965_v58 }
0x1a8d   :  { %2609 = vtanh.f32 %v1491_v38 }
0x1a97   :  { %v2610_v15 = vpop.eup %2609 }
0x1a98   :  { %1494 = vrot.lane.b32.xlu0 %v2610_v15, %s2654_s18 }
0x1b0a   :  { %v1495_v16 = vpop.permute.xlu0 %1494 }
0x1b0b   :  { %v1497_v17 = vmul.f32 %v2608_v13, %v1495_v16 }
0x1b0d   :  { %1500 = vrot.lane.b32.xlu1 %v1497_v17, %s2655_s19 }
0x1b7f   :  { %v1501_v18 = vpop.permute.xlu1 %1500 }
0x1b80   :  { %2364 = vmatmul.mubr.msk.f32.vlgmr.msra.gmra.mrb[14].mxu1 %vm190_vm2, %v1501_v18 }
0x1b81   :  { %2502 = vmatpush3.bf16.msra.mxu1 %v2900_v52  ;;  %2385 = vmatprep.mubr.msk.f32.mxu1 %vm2652_vm1, %v2653_v4 }
0x1b82   :  { %2503 = vmatprep.subr.bf16.mxu1 %v2651_v0 }
0x1b85   :  { %2505 = vmatpush3.bf16.msra.mxu1 %v2910_v55 }
0x1b86   :  { %2512 = vmatprep.subr.bf16.mxu1 %v2651_v0 }
0x1c53   :  { %v1570_v20 = vpop.f32.mrb[14].mxu1 }
0x1c54   :  { %v1574_v21 = vadd.f32 %v1570_v20, %v1169_v19  ;;  %v2365_v22 = vpop.f32.mrb[15].mxu1 }
0x1c56   :  { %2611 = vtanh.f32 %v1574_v21  ;;  %v2085_v24 = vmul.f32 -1.442695, %v1574_v21 }
0x1c58   :  { %2613 = vpow2.f32 %v2085_v24 }
0x1c60   :  { %v2612_v23 = vpop.eup %2611 }
0x1c61   :  { %1584 = vrot.lane.b32.xlu0 %v2612_v23, %s2654_s18 }
0x1c62   :  { %v2614_v25 = vpop.eup %2613 }
0x1c63   :  { %v1578_v26 = vadd.f32 1.0, %v2614_v25 }
0x1c65   :  { %2615 = vrcp.f32 %v1578_v26 }
0x1c6f   :  { %v2616_v27 = vpop.eup %2615 }
0x1c70   :  { %v1582_v30 = vmul.f32 %v2616_v27, %v1491_v38 }
0x1cd3   :  { %v1585_v28 = vpop.permute.xlu0 %1584 }
0x1cd4   :  { %v1587_v29 = vmul.f32 %v2616_v27, %v1585_v28 }
0x1cd6   :  { %1589 = vrot.lane.b32.xlu1 %v1587_v29, %s2654_s18  ;;  %v1189_v29 = vadd.f32 %v2963_v56, %v2936_v8  ;;  %v2094_v8 = vld [vmem:[%s3049_s5] ss:$0 sm:$0xff] }
0x1d48   :  { %v1590_v31 = vpop.permute.xlu1 %1589 }
0x1d49   :  { %v1592_v36 = vadd.f32 %v1590_v31, %v1582_v30 }
0x1d4b   :  { %2617 = vtanh.f32 %v1592_v36 }
0x1d55   :  { %v2618_v32 = vpop.eup %2617 }
0x1d56   :  { %1595 = vrot.lane.b32.xlu0 %v2618_v32, %s2654_s18 }
0x1dc8   :  { %v1596_v33 = vpop.permute.xlu0 %1595 }
0x1dc9   :  { %v1598_v35 = vmul.f32 %v2616_v27, %v1596_v33 }
0x1dcb   :  { %1601 = vrot.lane.b32.xlu1 %v1598_v35, %s2655_s19 }
0x1e3d   :  { %v1602_v37 = vpop.permute.xlu1 %1601 }
0x1e3e   :  { %2375 = vmatmul.mubr.msk.f32.vlgmr.msra.gmra.mrb[24].mxu0 %vm190_vm2, %v1602_v37 }
0x1e3f   :  { %2508 = vmatpush3.bf16.msra.mxu0 %v2900_v52  ;;  %2396 = vmatprep.mubr.msk.f32.mxu0 %vm2652_vm1, %v2653_v4 }
0x1e40   :  { %2509 = vmatprep.subr.bf16.mxu0 %v2651_v0 }
0x1e43   :  { %2511 = vmatpush3.bf16.msra.mxu0 %v2910_v55 }
0x1f11   :  { %v1671_v62 = vpop.f32.mrb[24].mxu0 }
0x1f12   :  { %v1675_v42 = vadd.f32 %v1671_v62, %v1174_v41  ;;  %v2376_v43 = vpop.f32.mrb[25].mxu0 }
0x1f14   :  { %2619 = vtanh.f32 %v1675_v42  ;;  %v2087_v45 = vmul.f32 -1.442695, %v1675_v42 }
0x1f16   :  { %2621 = vpow2.f32 %v2087_v45 }
0x1f1e   :  { %v2620_v44 = vpop.eup %2619 }
0x1f1f   :  { %1685 = vrot.lane.b32.xlu0 %v2620_v44, %s2654_s18 }
0x1f20   :  { %v2622_v46 = vpop.eup %2621 }
0x1f21   :  { %v1679_v47 = vadd.f32 1.0, %v2622_v46  ;;  %v12_v46 = vstv %s3050_s6 }
0x1f22   :  { %13 = vst [vmem:[#allocation4] sm:$0x1] %v12_v46 }
0x1f23   :  { %2623 = vrcp.f32 %v1679_v47 }
0x1f2d   :  { %v2624_v34 = vpop.eup %2623 }
0x1f2e   :  { %v1683_v50 = vmul.f32 %v2624_v34, %v1592_v36 }
0x1f91   :  { %v1686_v48 = vpop.permute.xlu0 %1685 }
0x1f92   :  { %v1688_v49 = vmul.f32 %v2624_v34, %v1686_v48 }
0x1f94   :  { %1690 = vrot.lane.b32.xlu1 %v1688_v49, %s2654_s18 }
0x2006   :  { %v1691_v51 = vpop.permute.xlu1 %1690 }
0x2007   :  { %v1693_v40 = vadd.f32 %v1691_v51, %v1683_v50 }
0x2009   :  { %2625 = vtanh.f32 %v1693_v40 }
0x2013   :  { %v2626_v53 = vpop.eup %2625 }
0x2014   :  { %1696 = vrot.lane.b32.xlu0 %v2626_v53, %s2654_s18 }
0x2086   :  { %v1697_v54 = vpop.permute.xlu0 %1696 }
0x2087   :  { %v1699_v57 = vmul.f32 %v2624_v34, %v1697_v54 }
0x2089   :  { %1702 = vrot.lane.b32.xlu1 %v1699_v57, %s2655_s19 }
0x20fb   :  { %v1703_v60 = vpop.permute.xlu1 %1702 }
0x20fc   :  { %2386 = vmatmul.mubr.msk.f32.vlgmr.msra.gmra.mrb[16].mxu1 %vm190_vm2, %v1703_v60 }
0x20fd   :  { %2514 = vmatpush3.bf16.msra.mxu1 %v2900_v52  ;;  %2407 = vmatprep.mubr.msk.f32.mxu1 %vm2652_vm1, %v2653_v4 }
0x20fe   :  { %2515 = vmatprep.subr.bf16.mxu1 %v2651_v0 }
0x2101   :  { %2517 = vmatpush3.bf16.msra.mxu1 %v2910_v55 }
0x21cf   :  { %v1772_v1 = vpop.f32.mrb[16].mxu1 }
0x21d0   :  { %v1776_v2 = vadd.f32 %v1772_v1, %v1179_v63  ;;  %v2387_v3 = vpop.f32.mrb[17].mxu1 }
0x21d2   :  { %2627 = vtanh.f32 %v1776_v2  ;;  %v2089_v6 = vmul.f32 -1.442695, %v1776_v2 }
0x21d4   :  { %2629 = vpow2.f32 %v2089_v6 }
0x21dc   :  { %v2628_v5 = vpop.eup %2627 }
0x21dd   :  { %1786 = vrot.lane.b32.xlu0 %v2628_v5, %s2654_s18 }
0x21de   :  { %v2630_v52 = vpop.eup %2629 }
0x21df   :  { %v1780_v7 = vadd.f32 1.0, %v2630_v52 }
0x21e1   :  { %2631 = vrcp.f32 %v1780_v7 }
0x21eb   :  { %v2632_v4 = vpop.eup %2631 }
0x21ec   :  { %v1784_v55 = vmul.f32 %v2632_v4, %v1693_v40  ;;  %v2095_v40 = vld [vmem:[#allocation4] ss:$0 sm:$0xff] }
0x224f   :  { %v1787_v9 = vpop.permute.xlu0 %1786 }
0x2250   :  { %v1789_v0 = vmul.f32 %v2632_v4, %v1787_v9 }
0x2252   :  { %1791 = vrot.lane.b32.xlu1 %v1789_v0, %s2654_s18 }
0x22c4   :  { %v1792_v12 = vpop.permute.xlu1 %1791 }
0x22c5   :  { %v1794_v39 = vadd.f32 %v1792_v12, %v1784_v55 }
0x22c7   :  { %2633 = vtanh.f32 %v1794_v39 }
0x22d1   :  { %v2634_v10 = vpop.eup %2633 }
0x22d2   :  { %1797 = vrot.lane.b32.xlu0 %v2634_v10, %s2654_s18 }
0x2344   :  { %v1798_v13 = vpop.permute.xlu0 %1797 }
0x2345   :  { %v1800_v61 = vmul.f32 %v2632_v4, %v1798_v13 }
0x2347   :  { %1803 = vrot.lane.b32.xlu1 %v1800_v61, %s2655_s19 }
0x23b9   :  { %v1804_v11 = vpop.permute.xlu1 %1803 }
0x23ba   :  { %2397 = vmatmul.mubr.msk.f32.vlgmr.msra.gmra.mrb[26].mxu0 %vm190_vm2, %v1804_v11 }
0x248d   :  { %v1873_v14 = vpop.f32.mrb[26].mxu0 }
0x248e   :  { %v1877_v38 = vadd.f32 %v1873_v14, %v1184_v59  ;;  %v2398_v15 = vpop.f32.mrb[27].mxu0 }
0x2490   :  { %2635 = vtanh.f32 %v1877_v38  ;;  %v2091_v17 = vmul.f32 -1.442695, %v1877_v38 }
0x2492   :  { %2637 = vpow2.f32 %v2091_v17 }
0x249a   :  { %v2636_v16 = vpop.eup %2635 }
0x249b   :  { %1887 = vrot.lane.b32.xlu0 %v2636_v16, %s2654_s18 }
0x249c   :  { %v2638_v18 = vpop.eup %2637 }
0x249d   :  { %v1881_v19 = vadd.f32 1.0, %v2638_v18 }
0x249f   :  { %2639 = vrcp.f32 %v1881_v19 }
0x24a9   :  { %v2640_v20 = vpop.eup %2639 }
0x24aa   :  { %v1885_v23 = vmul.f32 %v2640_v20, %v1794_v39 }
0x250d   :  { %v1888_v21 = vpop.permute.xlu0 %1887 }
0x250e   :  { %v1890_v22 = vmul.f32 %v2640_v20, %v1888_v21 }
0x2510   :  { %1892 = vrot.lane.b32.xlu1 %v1890_v22, %s2654_s18 }
0x2582   :  { %v1893_v24 = vpop.permute.xlu1 %1892 }
0x2583   :  { %v1895_v58 = vadd.f32 %v1893_v24, %v1885_v23 }
0x2585   :  { %2641 = vtanh.f32 %v1895_v58 }
0x258f   :  { %v2642_v25 = vpop.eup %2641 }
0x2590   :  { %1898 = vrot.lane.b32.xlu0 %v2642_v25, %s2654_s18 }
0x2602   :  { %v1899_v26 = vpop.permute.xlu0 %1898 }
0x2603   :  { %v1901_v27 = vmul.f32 %v2640_v20, %v1899_v26 }
0x2605   :  { %1904 = vrot.lane.b32.xlu1 %v1901_v27, %s2655_s19 }
0x2677   :  { %v1905_v28 = vpop.permute.xlu1 %1904 }
0x2678   :  { %2408 = vmatmul.mubr.msk.f32.vlgmr.msra.gmra.mrb[18].mxu1 %vm190_vm2, %v1905_v28 }
0x274b   :  { %v1974_v30 = vpop.f32.mrb[18].mxu1 }
0x274c   :  { %v1978_v31 = vadd.f32 %v1974_v30, %v1189_v29  ;;  %v2409_v36 = vpop.f32.mrb[19].mxu1 }
0x274e   :  { %2643 = vtanh.f32 %v1978_v31  ;;  %v2093_v33 = vmul.f32 -1.442695, %v1978_v31 }
0x2750   :  { %2645 = vpow2.f32 %v2093_v33 }
0x2758   :  { %v2644_v32 = vpop.eup %2643 }
0x2759   :  { %1988 = vrot.lane.b32.xlu0 %v2644_v32, %s2654_s18 }
0x275a   :  { %v2646_v35 = vpop.eup %2645 }
0x275b   :  { %v1982_v37 = vadd.f32 1.0, %v2646_v35 }
0x275d   :  { %2647 = vrcp.f32 %v1982_v37 }
0x2767   :  { %v2648_v41 = vpop.eup %2647 }
0x2768   :  { %v1986_v56 = vmul.f32 %v2648_v41, %v1895_v58 }
0x27cb   :  { %v1989_v62 = vpop.permute.xlu0 %1988 }
0x27cc   :  { %v1991_v42 = vmul.f32 %v2648_v41, %v1989_v62 }
0x27ce   :  { %1993 = vrot.lane.b32.xlu1 %v1991_v42, %s2654_s18 }
0x27d2   :  { %2009 = vrot.lane.b32.xlu1 %v2094_v8, %s2655_s19 }
0x2840   :  { %v1994_v43 = vpop.permute.xlu1 %1993 }
0x2841   :  { %v1996_v44 = vadd.f32 %v1994_v43, %v1986_v56 }
0x2843   :  { %2649 = vtanh.f32 %v1996_v44 }
0x2844   :  { %v2010_v34 = vpop.permute.xlu1 %2009 }
0x284d   :  { %v2650_v45 = vpop.eup %2649 }
0x284e   :  { %1999 = vrot.lane.b32.xlu0 %v2650_v45, %s2654_s18 }
0x28c0   :  { %v2000_v47 = vpop.permute.xlu0 %1999 }
0x28c1   :  { %v2002_v48 = vmul.f32 %v2648_v41, %v2000_v47 }
0x28c3   :  { %v2012_v49 = vmul.f32 %v2010_v34, %v2002_v48 }
0x28c5   :  { %2014 = vrot.lane.b32.xlu0 %v2012_v49, %s2655_s19 }
0x2937   :  { %v2015_v50 = vpop.permute.xlu0 %2014 }
0x2938   :  { %v2017_v51 = vsel %vm190_vm2, %v2015_v50, 0.0 }
0x2939   :  { %2018 = vadd.xlane.f32.xlu1 %v2017_v51 }
0x29c6   :  { %v2019_v53 = vpop.xlane.xlu1 %2018 }
0x29c7   :  { %v2027_v54 = vadd.f32 %v2095_v40, %v2019_v53 }
0x29c9   :  { %2029 = vst.msk [vmem:[%s3051_s7] sm:$0xff] %vm2028_vm3, %v2027_v54 }

</bundles_post_ra>
